<compile_context>
chip_gen: v7x
topology: tpu7x:2x2x1
jax: 0.10.0
libtpu: 0.0.40
codegen_flags: <defaults>
</compile_context>

<pallas_src>
import functools

import jax
import jax.numpy as jnp
import numpy as np
from jax.experimental import pallas as pl
from jax.experimental.pallas import tpu as pltpu


# ----------------------------------------------------------------------------
# Kernels
# ----------------------------------------------------------------------------

def _apply_act(y, act):
    if act == "silu":
        return y * jax.nn.sigmoid(y)
    if act == "relu":
        return jnp.maximum(y, 0.0)
    return y


def _conv_mxu_kernel(x_ref, w_ref, s_ref, b_ref, o_ref, *,
                     kh, kw, stride, dilation, row_tile, wout, act):
    """One (batch, group, row-tile) block of a dense/grouped conv + BN + act.

    x_ref: (1, 1, Hp, Wp, cin_g)        bf16, padded rows for this (batch, group)
    w_ref: (1, KH*KW, cin_g, cout_g)    bf16, per-tap weight slabs
    s_ref/b_ref: (1, 1, cout_g)         f32 folded-BN scale / shift
    o_ref: (1, 1, row_tile, Wout, cout_g) f32
    """
    i = pl.program_id(2)                                   # output-row tile index
    cin_g = x_ref.shape[-1]
    cout_g = o_ref.shape[-1]
    row0 = pl.multiple_of(i * (row_tile * stride), row_tile * stride)

    acc = jnp.zeros((row_tile * wout, cout_g), jnp.float32)
    for r in range(kh):                                    # taps unrolled at trace time
        for c in range(kw):
            t = r * kw + c
            if stride == 1:
                hsl = pl.ds(row0 + r * dilation, row_tile)
                wsl = pl.ds(c * dilation, wout)
            else:
                hsl = pl.ds(row0 + r * dilation, row_tile, stride)
                wsl = pl.ds(c * dilation, wout, stride)
            win = x_ref[0, 0, hsl, wsl, :]                 # (row_tile, Wout, cin_g) bf16
            acc = acc + jnp.dot(win.reshape(row_tile * wout, cin_g),
                                w_ref[0, t],
                                preferred_element_type=jnp.float32)
    y = acc * s_ref[0] + b_ref[0]                          # f32 BN epilogue
    y = _apply_act(y, act)
    o_ref[0, 0] = y.reshape(row_tile, wout, cout_g)


def _conv_dw_kernel(x_ref, w_ref, s_ref, b_ref, o_ref, *,
                    kh, kw, stride, dilation, row_tile, wout, act):
    """Depthwise conv + BN + act, pure VPU (channels stay in the lane dim).

    x_ref: (1, Hp, Wp, C) f32; w_ref: (KH*KW, C) f32; s_ref/b_ref: (1, C) f32
    o_ref: (1, row_tile, Wout, C) f32
    """
    i = pl.program_id(1)
    row0 = pl.multiple_of(i * (row_tile * stride), row_tile * stride)
    ch = o_ref.shape[-1]

    acc = jnp.zeros((row_tile, wout, ch), jnp.float32)
    for r in range(kh):
        for c in range(kw):
            t = r * kw + c
            if stride == 1:
                hsl = pl.ds(row0 + r * dilation, row_tile)
                wsl = pl.ds(c * dilation, wout)
            else:
                hsl = pl.ds(row0 + r * dilation, row_tile, stride)
                wsl = pl.ds(c * dilation, wout, stride)
            acc = acc + x_ref[0, hsl, wsl, :] * w_ref[t]   # per-channel MAC on the VPU
    y = acc * s_ref[0] + b_ref[0]
    y = _apply_act(y, act)
    o_ref[0] = y


# ----------------------------------------------------------------------------
# Wrapper (im2col-free conv + folded BN + activation)
# ----------------------------------------------------------------------------

def _pick_row_tile(hout, wout, ch, target_bytes=512 * 1024):
    """Largest divisor of Hout keeping one output block under target_bytes."""
    best = 1
    for t in range(1, hout + 1):
        if hout % t == 0 and t * wout * ch * 4 <= target_bytes:
            best = t
    return best


def conv_bn_act(x_nchw, weight, bn, *, stride=1, padding=None, dilation=1,
                groups=1, act="silu", row_tile=None):
    """Forward pass of Conv: SiLU(BN(Conv2d(x)))  (inference-mode BN).

    x_nchw: (B, C1, H, W); weight: (C2, C1//groups, KH, KW) (PyTorch layout);
    bn = (gamma, beta, running_mean, running_var, eps).
    """
    gamma, beta, mean, var, eps = bn
    cout, cin_g, kh, kw = weight.shape
    bsz, c1, h, w = x_nchw.shape
    assert c1 == cin_g * groups and cout % groups == 0
    if padding is None:                       # autopad(k) from the reference module
        padding = kh // 2

    # Fold BatchNorm (running stats) into a per-channel affine.
    scale = (gamma * jax.lax.rsqrt(var + eps)).astype(jnp.float32)
    shift = (beta - mean * scale).astype(jnp.float32)

    x = jnp.transpose(x_nchw, (0, 2, 3, 1)).astype(jnp.float32)     # NCHW -> NHWC
    xp = jnp.pad(x, ((0, 0), (padding, padding), (padding, padding), (0, 0)))
    hp, wp = h + 2 * padding, w + 2 * padding
    hout = (hp - dilation * (kh - 1) - 1) // stride + 1
    wout = (wp - dilation * (kw - 1) - 1) // stride + 1
    cout_g = cout // groups

    depthwise = (groups == c1 and cout == c1 and groups > 1)
    if row_tile is None:
        row_tile = _pick_row_tile(hout, wout, cout if depthwise else cout_g)
    assert hout % row_tile == 0, "row_tile must divide the output height"
    n_ht = hout // row_tile

    if depthwise:
        # --- depthwise path: VPU taps, channels in lanes, f32 throughout ----
        w_dw = jnp.transpose(weight.reshape(cout, kh * kw), (1, 0))  # (KH*KW, C)
        out = pl.pallas_call(
            functools.partial(_conv_dw_kernel, kh=kh, kw=kw, stride=stride,
                              dilation=dilation, row_tile=row_tile, wout=wout,
                              act=act),
            out_shape=jax.ShapeDtypeStruct((bsz, hout, wout, cout), jnp.float32),
            grid=(bsz, n_ht),
            in_specs=[
                pl.BlockSpec((1, hp, wp, c1), lambda b, i: (b, 0, 0, 0)),
                pl.BlockSpec((kh * kw, cout), lambda b, i: (0, 0)),
                pl.BlockSpec((1, cout), lambda b, i: (0, 0)),
                pl.BlockSpec((1, cout), lambda b, i: (0, 0)),
            ],
            out_specs=pl.BlockSpec((1, row_tile, wout, cout),
                                   lambda b, i: (b, i, 0, 0)),
            compiler_params=pltpu.CompilerParams(
                dimension_semantics=("parallel", "arbitrary"),
                vmem_limit_bytes=48 * 1024 * 1024),
        )(xp, w_dw, scale.reshape(1, cout), shift.reshape(1, cout))
    else:
        # --- dense / grouped path: per-group MXU matmul over fused taps ------
        # Regroup channels so each grid step sees its own dense weight slab.
        xg = jnp.transpose(xp.reshape(bsz, hp, wp, groups, cin_g),
                           (0, 3, 1, 2, 4)).astype(jnp.bfloat16)     # (B,G,Hp,Wp,cin_g)
        wm = jnp.transpose(weight.reshape(groups, cout_g, cin_g, kh, kw),
                           (0, 3, 4, 2, 1)).reshape(groups, kh * kw, cin_g, cout_g)
        wm = wm.astype(jnp.bfloat16)

        out5 = pl.pallas_call(
            functools.partial(_conv_mxu_kernel, kh=kh, kw=kw, stride=stride,
                              dilation=dilation, row_tile=row_tile, wout=wout,
                              act=act),
            out_shape=jax.ShapeDtypeStruct((bsz, groups, hout, wout, cout_g),
                                           jnp.float32),
            grid=(bsz, groups, n_ht),
            in_specs=[
                pl.BlockSpec((1, 1, hp, wp, cin_g), lambda b, g, i: (b, g, 0, 0, 0)),
                pl.BlockSpec((1, kh * kw, cin_g, cout_g), lambda b, g, i: (g, 0, 0, 0)),
                pl.BlockSpec((1, 1, cout_g), lambda b, g, i: (g, 0, 0)),
                pl.BlockSpec((1, 1, cout_g), lambda b, g, i: (g, 0, 0)),
            ],
            out_specs=pl.BlockSpec((1, 1, row_tile, wout, cout_g),
                                   lambda b, g, i: (b, g, i, 0, 0)),
            compiler_params=pltpu.CompilerParams(
                dimension_semantics=("parallel", "parallel", "arbitrary"),
                vmem_limit_bytes=48 * 1024 * 1024),
        )(xg, wm, scale.reshape(groups, 1, cout_g), shift.reshape(groups, 1, cout_g))
        out = jnp.transpose(out5, (0, 2, 3, 1, 4)).reshape(bsz, hout, wout, cout)

    return jnp.transpose(out, (0, 3, 1, 2))                          # NHWC -> NCHW


# ----------------------------------------------------------------------------
# Pure-JAX reference (used only for the self-check in __main__)
# ----------------------------------------------------------------------------

def _ref_conv_bn_act(x_nchw, weight, bn, *, stride, padding, dilation, groups,
                     act, bf16_inputs):
    gamma, beta, mean, var, eps = bn
    if bf16_inputs:   # match the kernel's bf16 MXU operands (f32 accumulation)
        x_nchw = x_nchw.astype(jnp.bfloat16).astype(jnp.float32)
        weight = weight.astype(jnp.bfloat16).astype(jnp.float32)
    y = jax.lax.conv_general_dilated(
        x_nchw.astype(jnp.float32), weight.astype(jnp.float32),
        window_strides=(stride, stride),
        padding=[(padding, padding), (padding, padding)],
        rhs_dilation=(dilation, dilation),
        dimension_numbers=("NCHW", "OIHW", "NCHW"),
        feature_group_count=groups,
        precision=jax.lax.Precision.HIGHEST)
    s = gamma * jax.lax.rsqrt(var + eps)
    y = y * s[None, :, None, None] + (beta - mean * s)[None, :, None, None]
    return _apply_act(y, act)


def _init_conv_params(key, c1, c2, k, groups):
    kw_, kg, kb, km, kv = jax.random.split(key, 5)
    weight = 0.1 * jax.random.normal(kw_, (c2, c1 // groups, k, k), jnp.float32)
    gamma = 1.0 + 0.1 * jax.random.normal(kg, (c2,), jnp.float32)
    beta = 0.1 * jax.random.normal(kb, (c2,), jnp.float32)
    mean = 0.1 * jax.random.normal(km, (c2,), jnp.float32)
    var = 1.0 + 0.1 * jnp.abs(jax.random.normal(kv, (c2,), jnp.float32))
    return weight, (gamma, beta, mean, var, 1e-5)


# ----------------------------------------------------------------------------

if __name__ == "__main__":
    key = jax.random.PRNGKey(0)
    kx, *pkeys = jax.random.split(key, 5)
    B, H, W = 2, 16, 16
    x = jax.random.normal(kx, (B, 4, H, W), jnp.float32)

    # (c1, c2, k, stride, groups, row_tile) -- all with act=True (SiLU), the Conv default.
    configs = [
        (4, 8, 3, 1, 1, 8),      # dense 3x3        (MXU path, 2 row tiles per batch)
        (8, 8, 3, 1, 8, 8),      # depthwise 3x3    (VPU path)
        (8, 8, 3, 1, 2, None),   # grouped 3x3, g=2 (per-group MXU grid axis)
        (8, 4, 1, 1, 1, None),   # pointwise 1x1    (MXU path)
    ]

    for (c1, c2, k, s, g, rt), pk in zip(configs, pkeys):
        assert x.shape[1] == c1
        weight, bn = _init_conv_params(pk, c1, c2, k, g)
        pad = k // 2                                   # autopad(k)
        fwd = jax.jit(functools.partial(conv_bn_act, stride=s, padding=pad,
                                        dilation=1, groups=g, act="silu",
                                        row_tile=rt))
        out = fwd(x, weight, bn)
        jax.block_until_ready(out)
        assert out.shape == (B, c2, H, W) and out.dtype == jnp.float32

        depthwise = (g == c1 and c2 == c1 and g > 1)
        ref = _ref_conv_bn_act(x, weight, bn, stride=s, padding=pad, dilation=1,
                               groups=g, act="silu", bf16_inputs=not depthwise)
        np.testing.assert_allclose(np.asarray(out), np.asarray(ref),
                                   rtol=2e-3, atol=2e-3)
        x = out

    print("KERNEL_OK")
</pallas_src>

<mosaic_0001>
module attributes {stable_mosaic.version = 11 : i64} {
  func.func @_conv_mxu_kernel(%arg0: i32, %arg1: i32, %arg2: i32, %arg3: memref<1x1x18x18x4xbf16, #tpu.memory_space<vmem>>, %arg4: memref<1x9x4x8xbf16, #tpu.memory_space<vmem>>, %arg5: memref<1x1x8xf32, #tpu.memory_space<vmem>>, %arg6: memref<1x1x8xf32, #tpu.memory_space<vmem>>, %arg7: memref<1x1x8x16x8xf32, #tpu.memory_space<vmem>>) attributes {dimension_semantics = [#tpu.dimension_semantics<parallel>, #tpu.dimension_semantics<parallel>, #tpu.dimension_semantics<arbitrary>], iteration_bounds = array<i64: 2, 1, 2>, scalar_prefetch = 0 : i64, scratch_operands = 0 : i64, tpu.core_type = #tpu.core_type<tc>, window_params = [{transform_indices = @transform_0, window_bounds = array<i64: 1, 1, 18, 18, 4>}, {transform_indices = @transform_1, window_bounds = array<i64: 1, 9, 4, 8>}, {transform_indices = @transform_2, window_bounds = array<i64: 1, 1, 8>}, {transform_indices = @transform_3, window_bounds = array<i64: 1, 1, 8>}, {transform_indices = @transform_4, window_bounds = array<i64: 1, 1, 8, 16, 8>}]} {
    %c8_i32 = arith.constant 8 : i32
    %0 = arith.muli %arg2, %c8_i32 : i32
    %1 = tpu.assume_multiple %0, 8 : i32
    %cst = arith.constant 0.000000e+00 : f32
    %2 = vector.broadcast %cst : f32 to vector<128x8xf32>
    %c0_i32 = arith.constant 0 : i32
    %3 = arith.addi %1, %c0_i32 : i32
    %c0 = arith.constant 0 : index
    %c0_0 = arith.constant 0 : index
    %4 = arith.index_cast %3 : i32 to index
    %c0_1 = arith.constant 0 : index
    %c0_2 = arith.constant 0 : index
    %5 = vector.load %arg3[%c0, %c0_0, %4, %c0_1, %c0_2] : memref<1x1x18x18x4xbf16, #tpu.memory_space<vmem>>, vector<1x1x8x16x4xbf16>
    %6 = vector.shape_cast %5 : vector<1x1x8x16x4xbf16> to vector<8x16x4xbf16>
    %7 = vector.shape_cast %6 : vector<8x16x4xbf16> to vector<128x4xbf16>
    %c0_3 = arith.constant 0 : index
    %c0_4 = arith.constant 0 : index
    %c0_5 = arith.constant 0 : index
    %c0_6 = arith.constant 0 : index
    %8 = vector.load %arg4[%c0_3, %c0_4, %c0_5, %c0_6] : memref<1x9x4x8xbf16, #tpu.memory_space<vmem>>, vector<1x1x4x8xbf16>
    %9 = vector.shape_cast %8 : vector<1x1x4x8xbf16> to vector<4x8xbf16>
    %cst_7 = arith.constant dense<0.000000e+00> : vector<128x8xf32>
    %10 = tpu.matmul %7, %9, %cst_7 {dimension_numbers = #tpu.dot_dimension_numbers<[1], [0], [0], [1], [0, 0, 1, 1], [], []>} : vector<128x4xbf16>, vector<4x8xbf16>, vector<128x8xf32> -> vector<128x8xf32>
    %11 = arith.addf %2, %10 : vector<128x8xf32>
    %c0_i32_8 = arith.constant 0 : i32
    %12 = arith.addi %1, %c0_i32_8 : i32
    %c0_9 = arith.constant 0 : index
    %c0_10 = arith.constant 0 : index
    %13 = arith.index_cast %12 : i32 to index
    %c1 = arith.constant 1 : index
    %c0_11 = arith.constant 0 : index
    %14 = vector.load %arg3[%c0_9, %c0_10, %13, %c1, %c0_11] : memref<1x1x18x18x4xbf16, #tpu.memory_space<vmem>>, vector<1x1x8x16x4xbf16>
    %15 = vector.shape_cast %14 : vector<1x1x8x16x4xbf16> to vector<8x16x4xbf16>
    %16 = vector.shape_cast %15 : vector<8x16x4xbf16> to vector<128x4xbf16>
    %c0_12 = arith.constant 0 : index
    %c1_13 = arith.constant 1 : index
    %c0_14 = arith.constant 0 : index
    %c0_15 = arith.constant 0 : index
    %17 = vector.load %arg4[%c0_12, %c1_13, %c0_14, %c0_15] : memref<1x9x4x8xbf16, #tpu.memory_space<vmem>>, vector<1x1x4x8xbf16>
    %18 = vector.shape_cast %17 : vector<1x1x4x8xbf16> to vector<4x8xbf16>
    %cst_16 = arith.constant dense<0.000000e+00> : vector<128x8xf32>
    %19 = tpu.matmul %16, %18, %cst_16 {dimension_numbers = #tpu.dot_dimension_numbers<[1], [0], [0], [1], [0, 0, 1, 1], [], []>} : vector<128x4xbf16>, vector<4x8xbf16>, vector<128x8xf32> -> vector<128x8xf32>
    %20 = arith.addf %11, %19 : vector<128x8xf32>
    %c0_i32_17 = arith.constant 0 : i32
    %21 = arith.addi %1, %c0_i32_17 : i32
    %c0_18 = arith.constant 0 : index
    %c0_19 = arith.constant 0 : index
    %22 = arith.index_cast %21 : i32 to index
    %c2 = arith.constant 2 : index
    %c0_20 = arith.constant 0 : index
    %23 = vector.load %arg3[%c0_18, %c0_19, %22, %c2, %c0_20] : memref<1x1x18x18x4xbf16, #tpu.memory_space<vmem>>, vector<1x1x8x16x4xbf16>
    %24 = vector.shape_cast %23 : vector<1x1x8x16x4xbf16> to vector<8x16x4xbf16>
    %25 = vector.shape_cast %24 : vector<8x16x4xbf16> to vector<128x4xbf16>
    %c0_21 = arith.constant 0 : index
    %c2_22 = arith.constant 2 : index
    %c0_23 = arith.constant 0 : index
    %c0_24 = arith.constant 0 : index
    %26 = vector.load %arg4[%c0_21, %c2_22, %c0_23, %c0_24] : memref<1x9x4x8xbf16, #tpu.memory_space<vmem>>, vector<1x1x4x8xbf16>
    %27 = vector.shape_cast %26 : vector<1x1x4x8xbf16> to vector<4x8xbf16>
    %cst_25 = arith.constant dense<0.000000e+00> : vector<128x8xf32>
    %28 = tpu.matmul %25, %27, %cst_25 {dimension_numbers = #tpu.dot_dimension_numbers<[1], [0], [0], [1], [0, 0, 1, 1], [], []>} : vector<128x4xbf16>, vector<4x8xbf16>, vector<128x8xf32> -> vector<128x8xf32>
    %29 = arith.addf %20, %28 : vector<128x8xf32>
    %c1_i32 = arith.constant 1 : i32
    %30 = arith.addi %1, %c1_i32 : i32
    %c0_26 = arith.constant 0 : index
    %c0_27 = arith.constant 0 : index
    %31 = arith.index_cast %30 : i32 to index
    %c0_28 = arith.constant 0 : index
    %c0_29 = arith.constant 0 : index
    %32 = vector.load %arg3[%c0_26, %c0_27, %31, %c0_28, %c0_29] : memref<1x1x18x18x4xbf16, #tpu.memory_space<vmem>>, vector<1x1x8x16x4xbf16>
    %33 = vector.shape_cast %32 : vector<1x1x8x16x4xbf16> to vector<8x16x4xbf16>
    %34 = vector.shape_cast %33 : vector<8x16x4xbf16> to vector<128x4xbf16>
    %c0_30 = arith.constant 0 : index
    %c3 = arith.constant 3 : index
    %c0_31 = arith.constant 0 : index
    %c0_32 = arith.constant 0 : index
    %35 = vector.load %arg4[%c0_30, %c3, %c0_31, %c0_32] : memref<1x9x4x8xbf16, #tpu.memory_space<vmem>>, vector<1x1x4x8xbf16>
    %36 = vector.shape_cast %35 : vector<1x1x4x8xbf16> to vector<4x8xbf16>
    %cst_33 = arith.constant dense<0.000000e+00> : vector<128x8xf32>
    %37 = tpu.matmul %34, %36, %cst_33 {dimension_numbers = #tpu.dot_dimension_numbers<[1], [0], [0], [1], [0, 0, 1, 1], [], []>} : vector<128x4xbf16>, vector<4x8xbf16>, vector<128x8xf32> -> vector<128x8xf32>
    %38 = arith.addf %29, %37 : vector<128x8xf32>
    %c1_i32_34 = arith.constant 1 : i32
    %39 = arith.addi %1, %c1_i32_34 : i32
    %c0_35 = arith.constant 0 : index
    %c0_36 = arith.constant 0 : index
    %40 = arith.index_cast %39 : i32 to index
    %c1_37 = arith.constant 1 : index
    %c0_38 = arith.constant 0 : index
    %41 = vector.load %arg3[%c0_35, %c0_36, %40, %c1_37, %c0_38] : memref<1x1x18x18x4xbf16, #tpu.memory_space<vmem>>, vector<1x1x8x16x4xbf16>
    %42 = vector.shape_cast %41 : vector<1x1x8x16x4xbf16> to vector<8x16x4xbf16>
    %43 = vector.shape_cast %42 : vector<8x16x4xbf16> to vector<128x4xbf16>
    %c0_39 = arith.constant 0 : index
    %c4 = arith.constant 4 : index
    %c0_40 = arith.constant 0 : index
    %c0_41 = arith.constant 0 : index
    %44 = vector.load %arg4[%c0_39, %c4, %c0_40, %c0_41] : memref<1x9x4x8xbf16, #tpu.memory_space<vmem>>, vector<1x1x4x8xbf16>
    %45 = vector.shape_cast %44 : vector<1x1x4x8xbf16> to vector<4x8xbf16>
    %cst_42 = arith.constant dense<0.000000e+00> : vector<128x8xf32>
    %46 = tpu.matmul %43, %45, %cst_42 {dimension_numbers = #tpu.dot_dimension_numbers<[1], [0], [0], [1], [0, 0, 1, 1], [], []>} : vector<128x4xbf16>, vector<4x8xbf16>, vector<128x8xf32> -> vector<128x8xf32>
    %47 = arith.addf %38, %46 : vector<128x8xf32>
    %c1_i32_43 = arith.constant 1 : i32
    %48 = arith.addi %1, %c1_i32_43 : i32
    %c0_44 = arith.constant 0 : index
    %c0_45 = arith.constant 0 : index
    %49 = arith.index_cast %48 : i32 to index
    %c2_46 = arith.constant 2 : index
    %c0_47 = arith.constant 0 : index
    %50 = vector.load %arg3[%c0_44, %c0_45, %49, %c2_46, %c0_47] : memref<1x1x18x18x4xbf16, #tpu.memory_space<vmem>>, vector<1x1x8x16x4xbf16>
    %51 = vector.shape_cast %50 : vector<1x1x8x16x4xbf16> to vector<8x16x4xbf16>
    %52 = vector.shape_cast %51 : vector<8x16x4xbf16> to vector<128x4xbf16>
    %c0_48 = arith.constant 0 : index
    %c5 = arith.constant 5 : index
    %c0_49 = arith.constant 0 : index
    %c0_50 = arith.constant 0 : index
    %53 = vector.load %arg4[%c0_48, %c5, %c0_49, %c0_50] : memref<1x9x4x8xbf16, #tpu.memory_space<vmem>>, vector<1x1x4x8xbf16>
    %54 = vector.shape_cast %53 : vector<1x1x4x8xbf16> to vector<4x8xbf16>
    %cst_51 = arith.constant dense<0.000000e+00> : vector<128x8xf32>
    %55 = tpu.matmul %52, %54, %cst_51 {dimension_numbers = #tpu.dot_dimension_numbers<[1], [0], [0], [1], [0, 0, 1, 1], [], []>} : vector<128x4xbf16>, vector<4x8xbf16>, vector<128x8xf32> -> vector<128x8xf32>
    %56 = arith.addf %47, %55 : vector<128x8xf32>
    %c2_i32 = arith.constant 2 : i32
    %57 = arith.addi %1, %c2_i32 : i32
    %c0_52 = arith.constant 0 : index
    %c0_53 = arith.constant 0 : index
    %58 = arith.index_cast %57 : i32 to index
    %c0_54 = arith.constant 0 : index
    %c0_55 = arith.constant 0 : index
    %59 = vector.load %arg3[%c0_52, %c0_53, %58, %c0_54, %c0_55] : memref<1x1x18x18x4xbf16, #tpu.memory_space<vmem>>, vector<1x1x8x16x4xbf16>
    %60 = vector.shape_cast %59 : vector<1x1x8x16x4xbf16> to vector<8x16x4xbf16>
    %61 = vector.shape_cast %60 : vector<8x16x4xbf16> to vector<128x4xbf16>
    %c0_56 = arith.constant 0 : index
    %c6 = arith.constant 6 : index
    %c0_57 = arith.constant 0 : index
    %c0_58 = arith.constant 0 : index
    %62 = vector.load %arg4[%c0_56, %c6, %c0_57, %c0_58] : memref<1x9x4x8xbf16, #tpu.memory_space<vmem>>, vector<1x1x4x8xbf16>
    %63 = vector.shape_cast %62 : vector<1x1x4x8xbf16> to vector<4x8xbf16>
    %cst_59 = arith.constant dense<0.000000e+00> : vector<128x8xf32>
    %64 = tpu.matmul %61, %63, %cst_59 {dimension_numbers = #tpu.dot_dimension_numbers<[1], [0], [0], [1], [0, 0, 1, 1], [], []>} : vector<128x4xbf16>, vector<4x8xbf16>, vector<128x8xf32> -> vector<128x8xf32>
    %65 = arith.addf %56, %64 : vector<128x8xf32>
    %c2_i32_60 = arith.constant 2 : i32
    %66 = arith.addi %1, %c2_i32_60 : i32
    %c0_61 = arith.constant 0 : index
    %c0_62 = arith.constant 0 : index
    %67 = arith.index_cast %66 : i32 to index
    %c1_63 = arith.constant 1 : index
    %c0_64 = arith.constant 0 : index
    %68 = vector.load %arg3[%c0_61, %c0_62, %67, %c1_63, %c0_64] : memref<1x1x18x18x4xbf16, #tpu.memory_space<vmem>>, vector<1x1x8x16x4xbf16>
    %69 = vector.shape_cast %68 : vector<1x1x8x16x4xbf16> to vector<8x16x4xbf16>
    %70 = vector.shape_cast %69 : vector<8x16x4xbf16> to vector<128x4xbf16>
    %c0_65 = arith.constant 0 : index
    %c7 = arith.constant 7 : index
    %c0_66 = arith.constant 0 : index
    %c0_67 = arith.constant 0 : index
    %71 = vector.load %arg4[%c0_65, %c7, %c0_66, %c0_67] : memref<1x9x4x8xbf16, #tpu.memory_space<vmem>>, vector<1x1x4x8xbf16>
    %72 = vector.shape_cast %71 : vector<1x1x4x8xbf16> to vector<4x8xbf16>
    %cst_68 = arith.constant dense<0.000000e+00> : vector<128x8xf32>
    %73 = tpu.matmul %70, %72, %cst_68 {dimension_numbers = #tpu.dot_dimension_numbers<[1], [0], [0], [1], [0, 0, 1, 1], [], []>} : vector<128x4xbf16>, vector<4x8xbf16>, vector<128x8xf32> -> vector<128x8xf32>
    %74 = arith.addf %65, %73 : vector<128x8xf32>
    %c2_i32_69 = arith.constant 2 : i32
    %75 = arith.addi %1, %c2_i32_69 : i32
    %c0_70 = arith.constant 0 : index
    %c0_71 = arith.constant 0 : index
    %76 = arith.index_cast %75 : i32 to index
    %c2_72 = arith.constant 2 : index
    %c0_73 = arith.constant 0 : index
    %77 = vector.load %arg3[%c0_70, %c0_71, %76, %c2_72, %c0_73] : memref<1x1x18x18x4xbf16, #tpu.memory_space<vmem>>, vector<1x1x8x16x4xbf16>
    %78 = vector.shape_cast %77 : vector<1x1x8x16x4xbf16> to vector<8x16x4xbf16>
    %79 = vector.shape_cast %78 : vector<8x16x4xbf16> to vector<128x4xbf16>
    %c0_74 = arith.constant 0 : index
    %c8 = arith.constant 8 : index
    %c0_75 = arith.constant 0 : index
    %c0_76 = arith.constant 0 : index
    %80 = vector.load %arg4[%c0_74, %c8, %c0_75, %c0_76] : memref<1x9x4x8xbf16, #tpu.memory_space<vmem>>, vector<1x1x4x8xbf16>
    %81 = vector.shape_cast %80 : vector<1x1x4x8xbf16> to vector<4x8xbf16>
    %cst_77 = arith.constant dense<0.000000e+00> : vector<128x8xf32>
    %82 = tpu.matmul %79, %81, %cst_77 {dimension_numbers = #tpu.dot_dimension_numbers<[1], [0], [0], [1], [0, 0, 1, 1], [], []>} : vector<128x4xbf16>, vector<4x8xbf16>, vector<128x8xf32> -> vector<128x8xf32>
    %83 = arith.addf %74, %82 : vector<128x8xf32>
    %c0_78 = arith.constant 0 : index
    %c0_79 = arith.constant 0 : index
    %c0_80 = arith.constant 0 : index
    %84 = vector.load %arg5[%c0_78, %c0_79, %c0_80] : memref<1x1x8xf32, #tpu.memory_space<vmem>>, vector<1x1x8xf32>
    %85 = vector.shape_cast %84 : vector<1x1x8xf32> to vector<1x8xf32>
    %86 = vector.broadcast %85 : vector<1x8xf32> to vector<128x8xf32>
    %87 = arith.mulf %83, %86 : vector<128x8xf32>
    %c0_81 = arith.constant 0 : index
    %c0_82 = arith.constant 0 : index
    %c0_83 = arith.constant 0 : index
    %88 = vector.load %arg6[%c0_81, %c0_82, %c0_83] : memref<1x1x8xf32, #tpu.memory_space<vmem>>, vector<1x1x8xf32>
    %89 = vector.shape_cast %88 : vector<1x1x8xf32> to vector<1x8xf32>
    %90 = vector.broadcast %89 : vector<1x8xf32> to vector<128x8xf32>
    %91 = arith.addf %87, %90 : vector<128x8xf32>
    %92 = arith.negf %91 : vector<128x8xf32>
    %93 = math.exp %92 : vector<128x8xf32>
    %cst_84 = arith.constant 1.000000e+00 : f32
    %94 = vector.broadcast %cst_84 : f32 to vector<128x8xf32>
    %95 = arith.addf %94, %93 : vector<128x8xf32>
    %96 = arith.divf %94, %95 : vector<128x8xf32>
    %97 = arith.mulf %91, %96 : vector<128x8xf32>
    %98 = vector.shape_cast %97 : vector<128x8xf32> to vector<8x16x8xf32>
    %c0_85 = arith.constant 0 : index
    %c0_86 = arith.constant 0 : index
    %c0_87 = arith.constant 0 : index
    %c0_88 = arith.constant 0 : index
    %c0_89 = arith.constant 0 : index
    %99 = vector.load %arg7[%c0_85, %c0_86, %c0_87, %c0_88, %c0_89] : memref<1x1x8x16x8xf32, #tpu.memory_space<vmem>>, vector<1x1x8x16x8xf32>
    %100 = vector.shape_cast %99 : vector<1x1x8x16x8xf32> to vector<8x16x8xf32>
    %101 = vector.shape_cast %98 : vector<8x16x8xf32> to vector<1x1x8x16x8xf32>
    tpu.vector_store %arg7[%c0_85, %c0_86, %c0_87, %c0_88, %c0_89], %101 {strides = array<i32>} : memref<1x1x8x16x8xf32, #tpu.memory_space<vmem>>, vector<1x1x8x16x8xf32>,
    return
  }
  func.func @transform_0(%arg0: i32, %arg1: i32, %arg2: i32) -> (i32, i32, i32, i32, i32) {
    %c0_i32 = arith.constant 0 : i32
    %c0_i32_0 = arith.constant 0 : i32
    %c0_i32_1 = arith.constant 0 : i32
    %c0_i32_2 = arith.constant 0 : i32
    return %arg0, %arg1, %c0_i32, %c0_i32_0, %c0_i32_1 : i32, i32, i32, i32, i32
  }
  func.func @transform_1(%arg0: i32, %arg1: i32, %arg2: i32) -> (i32, i32, i32, i32) {
    %c0_i32 = arith.constant 0 : i32
    %c0_i32_0 = arith.constant 0 : i32
    %c0_i32_1 = arith.constant 0 : i32
    %c0_i32_2 = arith.constant 0 : i32
    return %arg1, %c0_i32, %c0_i32_0, %c0_i32_1 : i32, i32, i32, i32
  }
  func.func @transform_2(%arg0: i32, %arg1: i32, %arg2: i32) -> (i32, i32, i32) {
    %c0_i32 = arith.constant 0 : i32
    %c0_i32_0 = arith.constant 0 : i32
    %c0_i32_1 = arith.constant 0 : i32
    return %arg1, %c0_i32, %c0_i32_0 : i32, i32, i32
  }
  func.func @transform_3(%arg0: i32, %arg1: i32, %arg2: i32) -> (i32, i32, i32) {
    %c0_i32 = arith.constant 0 : i32
    %c0_i32_0 = arith.constant 0 : i32
    %c0_i32_1 = arith.constant 0 : i32
    return %arg1, %c0_i32, %c0_i32_0 : i32, i32, i32
  }
  func.func @transform_4(%arg0: i32, %arg1: i32, %arg2: i32) -> (i32, i32, i32, i32, i32) {
    %c0_i32 = arith.constant 0 : i32
    %c0_i32_0 = arith.constant 0 : i32
    %c0_i32_1 = arith.constant 0 : i32
    return %arg0, %arg1, %arg2, %c0_i32, %c0_i32_0 : i32, i32, i32, i32, i32
  }
}

</mosaic_0001>

<bundles_post_ra>
// kernel: conv_bn_act.1
= control target key start
LH: loop header
LB: loop body
LE: loop exit
PB: predicated region body
PF: predicated region fallthrough
CT: control target
= control target key end

     0   :  { %s4001_s15 = smov 0   ;;  %s4003_s16 = smov 0   ;;  %s5069_s0 = inlined_call_operand.vmem [shape: bf16[2,1,18,18,4], index: 0, kind: input, shape index: {}]   ;;  %s5070_s1 = inlined_call_operand.vmem [shape: bf16[1,9,4,8], index: 1, kind: input, shape index: {}]   ;;  %s5071_s2 = inlined_call_operand.vmem [shape: f32[1,1,8], index: 2, kind: input, shape index: {}]   ;;  %s5072_s3 = inlined_call_operand.vmem [shape: f32[1,1,8], index: 3, kind: input, shape index: {}]   ;;  %s5073_s4 = inlined_call_operand.vmem [shape: f32[2,1,16,16,8], index: 4, kind: output, shape index: {}]  }
   0x1   :  { %s4005_s17 = smov 0   ;;  %s4007_s18 = smov 0  }
   0x2   :  { %s4009_s19 = smov 0  }
   0x3 LB: > { %s26_s20 = sadd.s32 1, %s3966_s17  ;;  %s33_s21 = sadd.s32 1, %s3970_s18  ;;  %s3974_s19 = sphi %s4009_s19, %s14_s19   ;;  %s3970_s18 = sphi %s4007_s18, %s5100_s18   ;;  %s3966_s17 = sphi %s4005_s17, %s5099_s17   ;;  %s3962_s16 = sphi %s4003_s16, %s5098_s16   ;;  %s3958_s15 = sphi %s4001_s15, %s5097_s15  }
   0x4   : > { %p27_p0 = scmp.ge.s32.totalorder %s26_s20, 2  ;;  %p3117_p1 = scmp.ge.s32.totalorder %s3974_s19, 1 }
   0x5   : > { %p217_p2 = scmp.lt.s32.totalorder %s3974_s19, 5 }
   0x6   : > { %s5102_s20 = smov (%p27_p0, %s26_s20), 0  ;;  %s5104_s21 = smov (!%p27_p0, %s33_s21), %s3970_s18 }
   0x7   : > { %p218_p3 = pnand %p3117_p1, %p217_p2  ;;  %p35_p4 = scmp.ge.s32.totalorder %s5104_s21, 2 }
   0x9   : > { %s5106_s21 = smov (%p35_p4, %s5104_s21), 0  ;;  %221 = sbr.rel (%p218_p3) target bundleno = 449 (0x1c1), region = 36 }
  0x10   : > { %v3126_v0 = vld [vmem:[%s5070_s1 + $0x2] sm:$0x3]  ;;  %vm578_vm0 = vcmask 1041408   ;;  %v3243_v1 = vld [vmem:[%s5070_s1 + $0x8] sm:$0x3]  ;;  %p267_p5 = scmp.lt.s32.totalorder %s3962_s16, 1 }
  0x11   : > { %3796 = vmatprep.subr.msk.bf16.mxu1 %vm578_vm0, %v3126_v0  ;;  %3800 = vmatprep.subr.msk.bf16.mxu0 %vm578_vm0, %v3243_v1  ;;  %v580_v2 = vsel %vm578_vm0, %v3126_v0, 0  ;;  %v4043_v3 = vsel %vm578_vm0, %v3243_v1, 0  ;;  %v323_v4 = vld [vmem:[%s5070_s1] sm:$0x3]  ;;  %s3422_s28 = smul.u32 96, %s3958_s15  ;;  %vm553_vm3 = vcmask 31744  }
  0x12   : > { %3505 = vmatpush3.bf16.msra.mxu1 %v580_v2  ;;  %3577 = vmatpush3.bf16.msra.mxu0 %v4043_v3  ;;  %s5108_s16 = smov (!%p267_p5, %s3962_s16), 1  ;;  %v3276_v5 = vld [vmem:[%s5070_s1 + $0xa] sm:$0x3]  ;;  %vm332_vm1 = vsmask.f32 3328  ;;  %v4085_v17 = vsel %vm578_vm0, %v323_v4, 0 }
  0x13   : > { %3797 = vmatprep.subr.msk.bf16.mxu1 %vm578_vm0, %v323_v4  ;;  %s3806_s5 = smul.u32 216, %s5108_s16  ;;  %3802 = vmatprep.subr.msk.bf16.mxu0 %vm578_vm0, %v3276_v5  ;;  %vm333_vm2 = vsmask.f32 7440  ;;  %v4091_v26 = vld [vmem:[%s5070_s1 + $0xc] sm:$0x3]  ;;  %v4108_v37 = vsel %vm578_vm0, %v3276_v5, 0 }
  0x14   : > { %vm4100_vm4 = vmor %vm332_vm1, %vm333_vm2  ;;  %v4112_v41 = vsel %vm578_vm0, %v4091_v26, 0  ;;  %vm867_vm5 = vcmask 1042432   ;;  %vm868_vm6 = vcmask 1046532   ;;  %v4900_v32 = vld [vmem:[%s5071_s2] ss:$0 sm:$0xff]  ;;  %s3119_s7 = sshll.u32 %s3958_s15, 3 }
  0x15   : > { %s275_s8 = scalar_lea.vmem %s5069_s0, %s3806_s5  ;;  %vm4255_vm7 = vmor %vm867_vm5, %vm868_vm6  ;;  %p4938_p6 = scmp.lt.s32.totalorder %s3119_s7, 15  ;;  %vm2926_vm8 = vcmask 64512  }
  0x16   : > { %s4061_s9 = scalar_lea.vmem %s275_s8, %s3422_s28 }
  0x17   : > { %v4064_v6 = vld [vmem:[%s4061_s9] sm:$0xf]  ;;  %v4067_v7 = vld [vmem:[%s4061_s9 + $0x4] sm:$0xf]  ;;  %v4070_v8 = vld [vmem:[%s4061_s9 + $0x8] sm:$0x1] }
  0x18   : > { %v336_v9 = vshrl.u32 %v4064_v6, 16  ;;  %v339_v10 = vshll.u32 %v4064_v6, 16  ;;  %v345_v11 = vshll.u32 %v4067_v7, 16  ;;  %v349_v12 = vshrl.u32 %v4067_v7, 16  ;;  %v3219_v13 = vld [vmem:[%s4061_s9 + $0xc] sm:$0xf] }
  0x19   : > { %v355_v14 = vshll.u32 %v4070_v8, 16  ;;  %v4079_v15 = vld [vmem:[%s4061_s9 + $0x10] sm:$0xf]  ;;  %v4082_v16 = vld [vmem:[%s4061_s9 + $0x14] sm:$0x1]  ;;  %v1319_v23 = vshrl.u32 %v3219_v13, 16 }
  0x1a   : > { %v338_v18 = vrot.slane %v336_v9, 4  ;;  %v341_v19 = vrot.slane %v339_v10, 5  ;;  %v347_v20 = vrot.slane %v345_v11, 5  ;;  %v351_v21 = vrot.slane %v349_v12, 4  ;;  %v4096_v31 = vld [vmem:[%s4061_s9 + $0xc] sm:$0xf] }
  0x1b   : > { %v357_v22 = vrot.slane %v355_v14, 5  ;;  %v1322_v24 = vshll.u32 %v3219_v13, 16  ;;  %v1328_v25 = vshll.u32 %v4079_v15, 16  ;;  %v1332_v29 = vshrl.u32 %v4079_v15, 16  ;;  %v4105_v36 = vld [vmem:[%s4061_s9 + $0x10] sm:$0xf] }
  0x1c   : > { %v342_v27 = vor.u32 %v341_v19, %v338_v18  ;;  %v352_v28 = vor.u32 %v351_v21, %v347_v20  ;;  %v1338_v30 = vshll.u32 %v4082_v16, 16  ;;  %v1321_v33 = vrot.slane %v1319_v23, 4  ;;  %v4115_v44 = vld [vmem:[%s4061_s9 + $0x14] sm:$0x1]  ;;  %v3222_v55 = vld [vmem:[%s4061_s9 + $0x18] sm:$0xf] }
  0x1d   : > { %v1324_v34 = vrot.slane %v1322_v24, 5  ;;  %v1330_v35 = vrot.slane %v1328_v25, 5  ;;  %v1334_v40 = vrot.slane %v1332_v29, 4  ;;  %v360_v45 = vshrl.u32 %v4096_v31, 16  ;;  %v4128_v60 = vld [vmem:[%s4061_s9 + $0x1c] sm:$0xf] }
  0x1e   : > { %v343_v38 = vrot.slane %v342_v27, 4  ;;  %v353_v39 = vrot.slane %v352_v28, 4  ;;  %v1340_v43 = vrot.slane %v1338_v30, 5  ;;  %v363_v46 = vshll.u32 %v4096_v31, 16  ;;  %v4136_v1 = vld [vmem:[%s4061_s9 + $0x20] sm:$0x1] }
  0x1f   : > { %v1325_v42 = vor.u32 %v1324_v34, %v1321_v33  ;;  %v1335_v49 = vor.u32 %v1334_v40, %v1330_v35  ;;  %v369_v50 = vshll.u32 %v4105_v36, 16  ;;  %v362_v53 = vrot.slane %v360_v45, 4  ;;  %v4144_v21 = vld [vmem:[%s4061_s9 + $0x18] sm:$0xf]  ;;  %v4151_v27 = vld [vmem:[%s4061_s9 + $0x1c] sm:$0xf] }
  0x20   : > { %v348_v47 = vsel %vm4100_vm4, %v343_v38, %v347_v20  ;;  %v358_v48 = vsel %vm4100_vm4, %v353_v39, %v357_v22  ;;  %v365_v54 = vrot.slane %v363_v46, 5  ;;  %v373_v58 = vshrl.u32 %v4105_v36, 16  ;;  %v4159_v38 = vld [vmem:[%s4061_s9 + $0x20] sm:$0x1]  ;;  %s5110_s7 = smov (!%p4938_p6, %s3119_s7), 15 }
  0x21   : > { %v3127_v51 = vcombine.low %v348_v47, %v358_v48  ;;  %v1326_v52 = vrot.slane %v1325_v42, 4  ;;  %v1336_v56 = vrot.slane %v1335_v49, 4  ;;  %v371_v57 = vrot.slane %v369_v50, 5  ;;  %v3225_v47 = vld [vmem:[%s4061_s9 + $0x24] sm:$0xf]  ;;  %s3120_s15 = sshll.u32 %s5110_s7, 1 }
  0x22   : > { %v379_v59 = vshll.u32 %v4115_v44, 16  ;;  %v1710_v62 = vrot.slane %v4079_v15, 5  ;;  %v1713_v63 = vrot.slane %v4082_v16, 5  ;;  %v366_v0 = vor.u32 %v365_v54, %v362_v53 }
  0x23   : > { %3506 = vmatprep.mubr.msk.bf16.mxu1 %vm553_vm3, %v3127_v51  ;;  %v1331_v61 = vsel %vm4100_vm4, %v1326_v52, %v1330_v35  ;;  %v1341_v2 = vsel %vm4100_vm4, %v1336_v56, %v1340_v43  ;;  %v375_v4 = vrot.slane %v373_v58, 4  ;;  %v1343_v9 = vshrl.u32 %v3222_v55, 16  ;;  %v4169_v52 = vld [vmem:[%s4061_s9 + $0x28] sm:$0xf] }
  0x24   : > { %v381_v5 = vrot.slane %v379_v59, 5  ;;  %v3244_v10 = vcombine.low %v1331_v61, %v1341_v2  ;;  %v367_v11 = vrot.slane %v366_v0, 4  ;;  %v1346_v12 = vshll.u32 %v3222_v55, 16  ;;  %v4181_v61 = vld [vmem:[%s4061_s9 + $0x2c] sm:$0x1] }
  0x25   : > { %v1352_v13 = vshll.u32 %v4128_v60, 16  ;;  %v376_v14 = vor.u32 %v375_v4, %v371_v57  ;;  %v1345_v18 = vrot.slane %v1343_v9, 4  ;;  %v1356_v19 = vshrl.u32 %v4128_v60, 16 }
  0x26   : > { %v1362_v20 = vshll.u32 %v4136_v1, 16  ;;  %3578 = vmatprep.mubr.msk.bf16.mxu0 %vm553_vm3, %v3244_v10  ;;  %v372_v22 = vsel %vm4100_vm4, %v367_v11, %v371_v57  ;;  %v1348_v23 = vrot.slane %v1346_v12, 5  ;;  %v1717_v25 = vrot.slane %v4128_v60, 5  ;;  %v4175_v57 = vld [vmem:[%s5070_s1 + $0x4] sm:$0x3] }
  0x27   : > { %v1354_v24 = vrot.slane %v1352_v13, 5  ;;  %v377_v28 = vrot.slane %v376_v14, 4  ;;  %v1358_v29 = vrot.slane %v1356_v19, 4  ;;  %v1720_v33 = vrot.slane %v4136_v1, 5  ;;  %v4188_v11 = vld [vmem:[%s4061_s9 + $0x24] sm:$0xf] }
  0x28   : > { %v1364_v30 = vrot.slane %v1362_v20, 5  ;;  %v1349_v34 = vor.u32 %v1348_v23, %v1345_v18  ;;  %v4156_v35 = vrot.slane %v1717_v25, 4  ;;  %v384_v39 = vshrl.u32 %v4144_v21, 16  ;;  %v4191_v19 = vld [vmem:[%s4061_s9 + $0x28] sm:$0xf] }
  0x29   : > { %v387_v40 = vshll.u32 %v4144_v21, 16  ;;  %v382_v42 = vsel %vm4100_vm4, %v377_v28, %v381_v5  ;;  %v1359_v43 = vor.u32 %v1358_v29, %v1354_v24  ;;  %v393_v45 = vshll.u32 %v4151_v27, 16  ;;  %v4201_v29 = vld [vmem:[%s4061_s9 + $0x2c] sm:$0x1] }
  0x2a   : > { %v397_v46 = vshrl.u32 %v4151_v27, 16  ;;  %v3128_v48 = vcombine.low %v372_v22, %v382_v42  ;;  %v1350_v49 = vrot.slane %v1349_v34, 4  ;;  %v386_v50 = vrot.slane %v384_v39, 4 }
  0x2b   : > { %v389_v51 = vrot.slane %v387_v40, 5  ;;  %v1360_v53 = vrot.slane %v1359_v43, 4  ;;  %v395_v54 = vrot.slane %v393_v45, 5  ;;  %v403_v56 = vshll.u32 %v4159_v38, 16  ;;  %v3228_v45 = vld [vmem:[%s4061_s9 + $0x30] sm:$0xf] }
  0x2c   : > { %v399_v55 = vrot.slane %v397_v46, 4  ;;  %3507 = vmatmul.mubr.msk.bf16.vlgmr.msra.gmra.mrb[0].mxu1 %vm553_vm3, %v3128_v48  ;;  %v1355_v58 = vsel %vm4100_vm4, %v1350_v49, %v1354_v24  ;;  %v1367_v0 = vshrl.u32 %v3225_v47, 16  ;;  %v1370_v2 = vshll.u32 %v3225_v47, 16 }
  0x2d   : > { %v390_v59 = vor.u32 %v389_v51, %v386_v50  ;;  %3523 = vmatpush3.bf16.msra.mxu1 %v4085_v17  ;;  %v1365_v4 = vsel %vm4100_vm4, %v1360_v53, %v1364_v30  ;;  %v405_v9 = vrot.slane %v403_v56, 5  ;;  %v1376_v10 = vshll.u32 %v4169_v52, 16  ;;  %v4211_v50 = vld [vmem:[%s4061_s9 + $0x34] sm:$0xf] }
  0x2e   : > { %v400_v5 = vor.u32 %v399_v55, %v395_v54  ;;  %v3245_v12 = vcombine.low %v1355_v58, %v1365_v4  ;;  %v1369_v14 = vrot.slane %v1367_v0, 4  ;;  %v1372_v18 = vrot.slane %v1370_v2, 5  ;;  %3798 = vmatprep.subr.msk.bf16.mxu1 %vm578_vm0, %v4175_v57  ;;  %v4221_v58 = vld [vmem:[%s4061_s9 + $0x38] sm:$0x1] }
  0x2f   : > { %v391_v13 = vrot.slane %v390_v59, 4  ;;  %v1378_v20 = vrot.slane %v1376_v10, 5  ;;  %v1380_v22 = vshrl.u32 %v4169_v52, 16  ;;  %v1386_v23 = vshll.u32 %v4181_v61, 16 }
  0x30   : > { %v401_v17 = vrot.slane %v400_v5, 4  ;;  %3579 = vmatmul.mubr.msk.bf16.vlgmr.msra.gmra.mrb[0].mxu0 %vm553_vm3, %v3245_v12  ;;  %v1373_v28 = vor.u32 %v1372_v18, %v1369_v14  ;;  %v408_v30 = vshrl.u32 %v4188_v11, 16  ;;  %v411_v34 = vshll.u32 %v4188_v11, 16  ;;  %v4226_v14 = vld [vmem:[%s4061_s9 + $0x30] sm:$0xf] }
  0x31   : > { %v396_v24 = vsel %vm4100_vm4, %v391_v13, %v395_v54  ;;  %3595 = vmatpush3.bf16.msra.mxu0 %v4108_v37  ;;  %v1382_v40 = vrot.slane %v1380_v22, 4  ;;  %v1388_v42 = vrot.slane %v1386_v23, 5  ;;  %v417_v43 = vshll.u32 %v4191_v19, 16  ;;  %v4232_v23 = vld [vmem:[%s4061_s9 + $0x34] sm:$0xf] }
  0x32   : > { %v406_v39 = vsel %vm4100_vm4, %v401_v17, %v405_v9  ;;  %v1374_v47 = vrot.slane %v1373_v28, 4  ;;  %v410_v48 = vrot.slane %v408_v30, 4  ;;  %v413_v49 = vrot.slane %v411_v34, 5  ;;  %3803 = vmatprep.subr.msk.bf16.mxu0 %vm578_vm0, %v4091_v26 }
  0x33   : > { %v3129_v46 = vcombine.low %v396_v24, %v406_v39  ;;  %v1383_v37 = vor.u32 %v1382_v40, %v1378_v20  ;;  %v419_v51 = vrot.slane %v417_v43, 5  ;;  %v421_v53 = vshrl.u32 %v4191_v19, 16  ;;  %v4237_v39 = vld [vmem:[%s4061_s9 + $0x38] sm:$0x1] }
  0x34   : > { %v427_v54 = vshll.u32 %v4201_v29, 16  ;;  %v1379_v55 = vsel %vm4100_vm4, %v1374_v47, %v1378_v20  ;;  %v414_v56 = vor.u32 %v413_v49, %v410_v48  ;;  %v1391_v59 = vshrl.u32 %v3228_v45, 16 }
  0x35   : > { %3510 = vmatprep.mubr.msk.bf16.mxu1 %vm553_vm3, %v3129_v46  ;;  %v1394_v0 = vshll.u32 %v3228_v45, 16  ;;  %v1384_v2 = vrot.slane %v1383_v37, 4  ;;  %v423_v26 = vrot.slane %v421_v53, 4  ;;  %v1400_v5 = vshll.u32 %v4211_v50, 16  ;;  %v3260_v37 = vld [vmem:[%s4061_s9 + $0xc] sm:$0xe] }
  0x36   : > { %v429_v4 = vrot.slane %v427_v54, 5  ;;  %v415_v9 = vrot.slane %v414_v56, 4  ;;  %v1393_v10 = vrot.slane %v1391_v59, 4  ;;  %v1404_v13 = vshrl.u32 %v4211_v50, 16  ;;  %v4249_v56 = vld [vmem:[%s4061_s9 + $0x3c] sm:$0xf] }
  0x37   : > { %v1396_v12 = vrot.slane %v1394_v0, 5  ;;  %v1389_v18 = vsel %vm4100_vm4, %v1384_v2, %v1388_v42  ;;  %v424_v17 = vor.u32 %v423_v26, %v419_v51  ;;  %v1402_v20 = vrot.slane %v1400_v5, 5 }
  0x38   : > { %v1410_v22 = vshll.u32 %v4221_v58, 16  ;;  %v3246_v24 = vcombine.low %v1379_v55, %v1389_v18  ;;  %v420_v28 = vsel %vm4100_vm4, %v415_v9, %v419_v51  ;;  %v1406_v34 = vrot.slane %v1404_v13, 4  ;;  %v4263_v18 = vld [vmem:[%s4061_s9 + $0x44] sm:$0x1] }
  0x39   : > { %v1397_v30 = vor.u32 %v1396_v12, %v1393_v10  ;;  %v425_v40 = vrot.slane %v424_v17, 4  ;;  %v432_v42 = vshrl.u32 %v4226_v14, 16  ;;  %v435_v45 = vshll.u32 %v4226_v14, 16  ;;  %v3261_v17 = vld [vmem:[%s4061_s9 + $0x18] sm:$0xe] }
  0x3a   : > { %v1412_v43 = vrot.slane %v1410_v22, 5  ;;  %3582 = vmatprep.mubr.msk.bf16.mxu0 %vm553_vm3, %v3246_v24  ;;  %v1407_v47 = vor.u32 %v1406_v34, %v1402_v20  ;;  %v441_v48 = vshll.u32 %v4232_v23, 16  ;;  %v445_v49 = vshrl.u32 %v4232_v23, 16 }
  0x3b   : > { %v1398_v46 = vrot.slane %v1397_v30, 4  ;;  %v430_v51 = vsel %vm4100_vm4, %v425_v40, %v429_v4  ;;  %v434_v53 = vrot.slane %v432_v42, 4  ;;  %v437_v54 = vrot.slane %v435_v45, 5  ;;  %v4260_v4 = vld [vmem:[%s4061_s9 + $0x40] sm:$0xf] }
  0x3c   : > { %v451_v55 = vshll.u32 %v4237_v39, 16  ;;  %v3130_v59 = vcombine.low %v420_v28, %v430_v51  ;;  %v1408_v2 = vrot.slane %v1407_v47, 4  ;;  %v443_v26 = vrot.slane %v441_v48, 5  ;;  %v4274_v30 = vld [vmem:[%s4061_s9 + $0x48] sm:$0xf] }
  0x3d   : > { %v1403_v0 = vsel %vm4100_vm4, %v1398_v46, %v1402_v20  ;;  %v438_v9 = vor.u32 %v437_v54, %v434_v53  ;;  %v447_v10 = vrot.slane %v445_v49, 4  ;;  %v3268_v13 = vrot.slane %v3260_v37, 9 }
  0x3e   : > { %v453_v12 = vrot.slane %v451_v55, 5  ;;  %3511 = vmatmul.mubr.msk.bf16.gmra.mrb[4].mxu1 %vm553_vm3, %v3130_v59  ;;  %v1413_v20 = vsel %vm4100_vm4, %v1408_v2, %v1412_v43  ;;  %v1712_v22 = vrot.slane %v1710_v62, 4  ;;  %v456_v24 = vshrl.u32 %v4249_v56, 16  ;;  %v4294_v55 = vld [vmem:[%s4061_s9 + $0x50] sm:$0x1] }
  0x3f   : > { %v459_v28 = vshll.u32 %v4249_v56, 16  ;;  %v3247_v34 = vcombine.low %v1403_v0, %v1413_v20  ;;  %v439_v40 = vrot.slane %v438_v9, 4  ;;  %v448_v42 = vor.u32 %v447_v10, %v443_v26 }
  0x40   : > { %v1711_v45 = vsel %vm4255_vm7, %v3268_v13, %v1710_v62  ;;  %v1714_v43 = vsel %vm4255_vm7, %v1712_v22, %v1713_v63  ;;  %v458_v46 = vrot.slane %v456_v24, 4  ;;  %v465_v48 = vshll.u32 %v4260_v4, 16  ;;  %v4290_v62 = vld [vmem:[%s4061_s9 + $0x4c] sm:$0xf] }
  0x41   : > { %v461_v47 = vrot.slane %v459_v28, 5  ;;  %3583 = vmatmul.mubr.msk.bf16.gmra.mrb[4].mxu0 %vm553_vm3, %v3247_v34  ;;  %v444_v49 = vsel %vm4100_vm4, %v439_v40, %v443_v26  ;;  %v449_v37 = vrot.slane %v448_v42, 4  ;;  %v3277_v15 = vcombine.low %v1711_v45, %v1714_v43  ;;  %v4312_v28 = vld [vmem:[%s4061_s9 + $0x54] sm:$0xf]  ;;  %v4323_v34 = vld [vmem:[%s5070_s1 + $0xe] sm:$0x3] }
  0x42   : > { %v469_v51 = vshrl.u32 %v4260_v4, 16  ;;  %v467_v53 = vrot.slane %v465_v48, 5  ;;  %v475_v63 = vshll.u32 %v4263_v18, 16  ;;  %v3269_v54 = vrot.slane %v3261_v17, 9 }
  0x43   : > { %v462_v16 = vor.u32 %v461_v47, %v458_v46  ;;  %v454_v59 = vsel %vm4100_vm4, %v449_v37, %v453_v12  ;;  %3596 = vmatprep.mubr.msk.bf16.mxu0 %vm553_vm3, %v3277_v15  ;;  %v1721_v2 = vsel %vm4255_vm7, %v4156_v35, %v1720_v33  ;;  %v480_v26 = vshrl.u32 %v4274_v30, 16  ;;  %v3262_v12 = vld [vmem:[%s4061_s9 + $0x24] sm:$0xe]  ;;  %v4328_v37 = vld [vmem:[%s4061_s9 + $0x58] sm:$0xf] }
  0x44   : > { %v471_v0 = vrot.slane %v469_v51, 4  ;;  %v3131_v9 = vcombine.low %v444_v49, %v454_v59  ;;  %v477_v13 = vrot.slane %v475_v63, 5  ;;  %v1718_v17 = vsel %vm4255_vm7, %v3269_v54, %v1717_v25  ;;  %v4337_v54 = vld [vmem:[%s4061_s9 + $0x5c] sm:$0x1] }
  0x45   : > { %v463_v10 = vrot.slane %v462_v16, 4  ;;  %v3278_v22 = vcombine.low %v1718_v17, %v1721_v2  ;;  %v482_v24 = vrot.slane %v480_v26, 4  ;;  %v483_v1 = vshll.u32 %v4274_v30, 16 }
  0x46   : > { %v472_v20 = vor.u32 %v471_v0, %v467_v53  ;;  %3514 = vmatprep.mubr.msk.bf16.mxu1 %vm553_vm3, %v3131_v9  ;;  %v489_v35 = vshll.u32 %v4290_v62, 16  ;;  %v493_v60 = vshrl.u32 %v4290_v62, 16  ;;  %v499_v25 = vshll.u32 %v4294_v55, 16 }
  0x47   : > { %v468_v33 = vsel %vm4100_vm4, %v463_v10, %v467_v53  ;;  %v485_v42 = vrot.slane %v483_v1, 5  ;;  %v3270_v45 = vrot.slane %v3262_v12, 9  ;;  %v1724_v43 = vrot.slane %v4169_v52, 5  ;;  %v3263_v10 = vld [vmem:[%s4061_s9 + $0x30] sm:$0xe] }
  0x48   : > { %v473_v40 = vrot.slane %v472_v20, 4  ;;  %v491_v46 = vrot.slane %v489_v35, 5  ;;  %v495_v47 = vrot.slane %v493_v60, 4  ;;  %v501_v48 = vrot.slane %v499_v25, 5 }
  0x49   : > { %v1727_v49 = vrot.slane %v4181_v61, 5  ;;  %3597 = vmatmul.mubr.msk.bf16.vlgmr.msra.gmra.mrb[0].mxu0 %vm553_vm3, %v3278_v22  ;;  %v486_v51 = vor.u32 %v485_v42, %v482_v24  ;;  %v1725_v16 = vsel %vm4255_vm7, %v3270_v45, %v1724_v43  ;;  %v1726_v53 = vrot.slane %v1724_v43, 4  ;;  %v4358_v42 = vld [vmem:[%s4061_s9 + $0x40] sm:$0xf]  ;;  %v4361_v45 = vld [vmem:[%s4061_s9 + $0x44] sm:$0x1] }
  0x4a   : > { %v478_v15 = vsel %vm4100_vm4, %v473_v40, %v477_v13  ;;  %3613 = vmatpush3.bf16.msra.mxu0 %v4112_v41  ;;  %v496_v52 = vor.u32 %v495_v47, %v491_v46  ;;  %v504_v61 = vshrl.u32 %v4312_v28, 16  ;;  %v507_v59 = vshll.u32 %v4312_v28, 16 }
  0x4b   : > { %v3132_v63 = vcombine.low %v468_v33, %v478_v15  ;;  %v487_v0 = vrot.slane %v486_v51, 4  ;;  %v1728_v2 = vsel %vm4255_vm7, %v1726_v53, %v1727_v49  ;;  %v513_v26 = vshll.u32 %v4328_v37, 16  ;;  %3804 = vmatprep.subr.msk.bf16.mxu0 %vm578_vm0, %v4323_v34  ;;  %v3264_v33 = vld [vmem:[%s4061_s9 + $0x3c] sm:$0xe] }
  0x4c   : > { %v517_v9 = vshrl.u32 %v4328_v37, 16  ;;  %v497_v41 = vrot.slane %v496_v52, 4  ;;  %v3279_v13 = vcombine.low %v1725_v16, %v1728_v2  ;;  %v506_v17 = vrot.slane %v504_v61, 4  ;;  %v3265_v2 = vld [vmem:[%s4061_s9 + $0x48] sm:$0xe] }
  0x4d   : > { %3515 = vmatmul.mubr.msk.bf16.gmra.mrb[8].mxu1 %vm553_vm3, %v3132_v63  ;;  %v509_v12 = vrot.slane %v507_v59, 5  ;;  %v492_v20 = vsel %vm4100_vm4, %v487_v0, %v491_v46  ;;  %v515_v22 = vrot.slane %v513_v26, 5  ;;  %v523_v1 = vshll.u32 %v4337_v54, 16  ;;  %v4376_v59 = vld [vmem:[%s4061_s9 + $0x4c] sm:$0xf] }
  0x4e   : > { %v519_v24 = vrot.slane %v517_v9, 4  ;;  %v502_v35 = vsel %vm4100_vm4, %v497_v41, %v501_v48  ;;  %3600 = vmatprep.mubr.msk.bf16.mxu0 %vm553_vm3, %v3279_v13  ;;  %v3271_v25 = vrot.slane %v3263_v10, 9  ;;  %v1731_v40 = vrot.slane %v4211_v50, 5  ;;  %v4379_v0 = vld [vmem:[%s4061_s9 + $0x50] sm:$0x1] }
  0x4f   : > { %v510_v60 = vor.u32 %v509_v12, %v506_v17  ;;  %v3133_v43 = vcombine.low %v492_v20, %v502_v35  ;;  %v525_v47 = vrot.slane %v523_v1, 5  ;;  %v1734_v49 = vrot.slane %v4221_v58, 5  ;;  %v4387_v17 = vld [vmem:[%s4061_s9 + $0x58] sm:$0xf]  ;;  %v4390_v12 = vld [vmem:[%s4061_s9 + $0x5c] sm:$0x1] }
  0x50   : > { %v520_v46 = vor.u32 %v519_v24, %v515_v22  ;;  %v1732_v48 = vsel %vm4255_vm7, %v3271_v25, %v1731_v40  ;;  %v1733_v51 = vrot.slane %v1731_v40, 4  ;;  %v3272_v16 = vrot.slane %v3264_v33, 9  ;;  %5083 = vst [vmem:[#allocation2_spill] sm:$0xff] %v4390_v12  ;;  %v4400_v35 = vld [vmem:[%s4061_s9 + $0x64] sm:$0xf] }
  0x51   : > { %v511_v15 = vrot.slane %v510_v60, 4  ;;  %3518 = vmatprep.mubr.msk.bf16.mxu1 %vm553_vm3, %v3133_v43  ;;  %v1738_v53 = vrot.slane %v4358_v42, 5  ;;  %v1741_v63 = vrot.slane %v4361_v45, 5  ;;  %v3143_v61 = vcombine.low %v4064_v6, %v4067_v7  ;;  %v3266_v6 = vld [vmem:[%s4061_s9 + $0x54] sm:$0xe]  ;;  %5084 = vst [vmem:[#allocation3_spill] sm:$0xff] %v4400_v35 }
  0x52   : > { %v521_v50 = vrot.slane %v520_v46, 4  ;;  %v1735_v58 = vsel %vm4255_vm7, %v1733_v51, %v1734_v49  ;;  %v1745_v24 = vrot.slane %v4376_v59, 5  ;;  %v1748_v1 = vrot.slane %v4379_v0, 5  ;;  %v4403_v60 = vld [vmem:[%s4061_s9 + $0x68] sm:$0x1] }
  0x53   : > { %v516_v52 = vsel %vm4100_vm4, %v511_v15, %v515_v22  ;;  %v3280_v9 = vcombine.low %v1732_v48, %v1735_v58  ;;  %v1739_v10 = vsel %vm4255_vm7, %v3272_v16, %v1738_v53  ;;  %v1740_v41 = vrot.slane %v1738_v53, 4  ;;  %5085 = vst [vmem:[#allocation4_spill] sm:$0xff] %v4403_v60 }
  0x54   : > { %v526_v26 = vsel %vm4100_vm4, %v521_v50, %v525_v47  ;;  %v3273_v22 = vrot.slane %v3265_v2, 9  ;;  %v1747_v40 = vrot.slane %v1745_v24, 4  ;;  %v3274_v43 = vrot.slane %v3266_v6, 9  ;;  %v3267_v47 = vld [vmem:[%s4061_s9 + $0x60] sm:$0xe] }
  0x55   : > { %v3134_v13 = vcombine.low %v516_v52, %v526_v26  ;;  %3601 = vmatmul.mubr.msk.bf16.gmra.mrb[4].mxu0 %vm553_vm3, %v3280_v9  ;;  %v1742_v20 = vsel %vm4255_vm7, %v1740_v41, %v1741_v63  ;;  %v1752_v46 = vrot.slane %v4387_v17, 5  ;;  %v879_v49 = vrot.slane %v4105_v36, 5  ;;  %v845_v2 = vld [vmem:[%s4061_s9 + $0x18] sm:$0xe]  ;;  %v4435_v6 = vld [vmem:[%s5070_s1 + $0x6] sm:$0x3] }
  0x56   : > { %v3281_v33 = vcombine.low %v1739_v10, %v1742_v20  ;;  %v1746_v25 = vsel %vm4255_vm7, %v3273_v22, %v1745_v24  ;;  %v1755_v15 = vrot.slane %v4390_v12, 5  ;;  %v1749_v48 = vsel %vm4255_vm7, %v1747_v40, %v1748_v1  ;;  %v847_v1 = vld [vmem:[%s4061_s9 + $0x30] sm:$0xe] }
  0x57   : > { %3519 = vmatmul.mubr.msk.bf16.gmra.mrb[12].mxu1 %vm553_vm3, %v3134_v13  ;;  %v1753_v51 = vsel %vm4255_vm7, %v3274_v43, %v1752_v46  ;;  %v1754_v16 = vrot.slane %v1752_v46, 4  ;;  %v1759_v50 = vrot.slane %v4400_v35, 5  ;;  %v3144_v53 = vcombine.low %v4096_v31, %v4105_v36  ;;  %v846_v36 = vld [vmem:[%s4061_s9 + $0x24] sm:$0xe]  ;;  %v4709_v12 = vld [vmem:[%s4061_s9 + $0x70] sm:$0xf] }
  0x58   : > { %3524 = vmatprep.mubr.msk.bf16.mxu1 %vm553_vm3, %v3143_v61  ;;  %3604 = vmatprep.mubr.msk.bf16.mxu0 %vm553_vm3, %v3281_v33  ;;  %v3282_v63 = vcombine.low %v1746_v25, %v1749_v48  ;;  %v3275_v52 = vrot.slane %v3267_v47, 9  ;;  %v1762_v58 = vrot.slane %v4403_v60, 5  ;;  %v844_v61 = vld [vmem:[%s4061_s9 + $0xc] sm:$0xe]  ;;  %v882_v26 = vrot.slane %v4115_v44, 5 }
  0x59   : > { %v3145_v9 = vcombine.low %v4144_v21, %v4151_v27  ;;  %v1756_v10 = vsel %vm4255_vm7, %v1754_v16, %v1755_v15  ;;  %v1761_v41 = vrot.slane %v1759_v50, 4  ;;  %v977_v13 = vsel %vm578_vm0, %v4175_v57, 0  ;;  %v3852_v16 = vld [vmem:[%s4061_s9 + $0x18] sm:$0xff]   ;;  %v4681_v60 = vld [vmem:[%s4061_s9 + $0x64] sm:$0xf] }
  0x5a   : > { %v3283_v31 = vcombine.low %v1753_v51, %v1756_v10  ;;  %v3160_v44 = vrot.slane %v844_v61, 9  ;;  %v881_v20 = vrot.slane %v879_v49, 4  ;;  %v3161_v21 = vrot.slane %v845_v2, 9  ;;  %5086 = vst [vmem:[#allocation5_spill] sm:$0xff] %v4681_v60 }
  0x5b   : > { %v1760_v22 = vsel %vm4255_vm7, %v3275_v52, %v1759_v50  ;;  %v1763_v57 = vsel %vm4255_vm7, %v1761_v41, %v1762_v58  ;;  %v886_v24 = vrot.slane %v4151_v27, 5  ;;  %v889_v40 = vrot.slane %v4159_v38, 5 }
  0x5c   : > { %v4448_v33 = vsel %vm4255_vm7, %v3160_v44, %v879_v49  ;;  %v4452_v25 = vsel %vm4255_vm7, %v881_v20, %v882_v26  ;;  %v3162_v43 = vrot.slane %v846_v36, 9  ;;  %v3284_v49 = vcombine.low %v1760_v22, %v1763_v57  ;;  %v3328_v26 = vld [vmem:[%s4061_s9 + $0x18] sm:$0xf]  ;;  %v3854_v57 = vld [vmem:[%s4061_s9 + $0x24] sm:$0xff]  }
  0x5d   : > { %3605 = vmatmul.mubr.msk.bf16.gmra.mrb[8].mxu0 %vm553_vm3, %v3282_v63  ;;  %v3169_v27 = vcombine.low %v4448_v33, %v4452_v25  ;;  %v4461_v46 = vsel %vm4255_vm7, %v3161_v21, %v886_v24  ;;  %v888_v47 = vrot.slane %v886_v24, 4  ;;  %v893_v15 = vrot.slane %v4191_v19, 5 }
  0x5e   : > { %3608 = vmatprep.mubr.msk.bf16.mxu0 %vm553_vm3, %v3283_v31  ;;  %v896_v48 = vrot.slane %v4201_v29, 5  ;;  %v3163_v38 = vrot.slane %v847_v1, 9  ;;  %v3146_v51 = vcombine.low %v4188_v11, %v4191_v19  ;;  %v903_v63 = vrot.slane %v4237_v39, 5  ;;  %v848_v19 = vld [vmem:[%s4061_s9 + $0x3c] sm:$0xe] }
  0x5f   : > { %3525 = vmatmul.mubr.msk.bf16.vlgmr.msra.gmra.mrb[0].mxu1 %vm553_vm3, %v3144_v53  ;;  %v4470_v50 = vsel %vm4255_vm7, %v888_v47, %v889_v40  ;;  %v900_v53 = vrot.slane %v4232_v23, 5  ;;  %v3147_v52 = vcombine.low %v4226_v14, %v4232_v23  ;;  %v4480_v58 = vsel %vm4255_vm7, %v3162_v43, %v893_v15  ;;  %v843_v14 = vld [vmem:[%s4061_s9] sm:$0xe]  ;;  %v4508_v31 = vld [vmem:[%s4061_s9 + $0x1c] sm:$0xf] }
  0x60   : > { %3541 = vmatpush3.bf16.msra.mxu1 %v977_v13  ;;  %3528 = vmatprep.mubr.msk.bf16.mxu1 %vm553_vm3, %v3145_v9  ;;  %v3170_v29 = vcombine.low %v4461_v46, %v4470_v50  ;;  %v895_v11 = vrot.slane %v893_v15, 4  ;;  %v872_v61 = vrot.slane %v4067_v7, 5  ;;  %v3164_v10 = vrot.slane %v848_v19, 9  ;;  %v849_v1 = vld [vmem:[%s4061_s9 + $0x48] sm:$0xe] }
  0x61   : > { %3799 = vmatprep.subr.msk.bf16.mxu1 %vm578_vm0, %v4435_v6  ;;  %v4486_v2 = vsel %vm4255_vm7, %v3163_v38, %v900_v53  ;;  %v902_v39 = vrot.slane %v900_v53, 4  ;;  %v875_v41 = vrot.slane %v4070_v8, 5  ;;  %v3159_v36 = vrot.slane %v843_v14, 9  ;;  %v4534_v38 = vld [vmem:[%s5070_s1 + $0x10] sm:$0x3] }
  0x62   : > { %v4492_v23 = vsel %vm4255_vm7, %v895_v11, %v896_v48  ;;  %v874_v44 = vrot.slane %v872_v61, 4  ;;  %v907_v20 = vrot.slane %v4260_v4, 5  ;;  %v910_v21 = vrot.slane %v4263_v18, 5  ;;  %v4555_v14 = vld [vmem:[%s4061_s9 + $0x28] sm:$0xf] }
  0x63   : > { %v4501_v9 = vsel %vm4255_vm7, %v902_v39, %v903_v63  ;;  %v3148_v22 = vcombine.low %v4249_v56, %v4260_v4  ;;  %v2157_v24 = vshrl.u32 %v3328_v26, 16  ;;  %v2160_v8 = vshll.u32 %v3328_v26, 16  ;;  %v3856_v4 = vld [vmem:[%s4061_s9 + $0x30] sm:$0xff]   ;;  %v4657_v46 = vld [vmem:[%s4061_s9 + $0x44] sm:$0x1] }
  0x64   : > { %v2166_v40 = vshll.u32 %v4508_v31, 16  ;;  %v2170_v43 = vshrl.u32 %v4508_v31, 16  ;;  %v4520_v47 = vsel %vm4255_vm7, %v3164_v10, %v907_v20  ;;  %v2399_v18 = vsel %vm578_vm0, %v4323_v34, 0  ;;  %v3346_v7 = vld [vmem:[%s4061_s9 + $0x60] sm:$0xf] }
  0x65   : > { %3609 = vmatmul.mubr.msk.bf16.gmra.mrb[12].mxu0 %vm553_vm3, %v3284_v49  ;;  %v909_v49 = vrot.slane %v907_v20, 4  ;;  %v3149_v56 = vcombine.low %v4274_v30, %v4290_v62  ;;  %v873_v15 = vsel %vm4255_vm7, %v3159_v36, %v872_v61  ;;  %v876_v48 = vsel %vm4255_vm7, %v874_v44, %v875_v41  ;;  %v4542_v30 = vld [vmem:[%s4061_s9 + $0x20] sm:$0x1]  ;;  %v3331_v61 = vld [vmem:[%s4061_s9 + $0x24] sm:$0xf] }
  0x66   : > { %3614 = vmatprep.mubr.msk.bf16.mxu0 %vm553_vm3, %v3852_v16  ;;  %v3165_v34 = vrot.slane %v849_v1, 9  ;;  %v2159_v16 = vrot.slane %v2157_v24, 4  ;;  %v2162_v53 = vrot.slane %v2160_v8, 5  ;;  %v4548_v11 = vrot.slane %v2166_v40, 5  ;;  %v850_v44 = vld [vmem:[%s4061_s9 + $0x54] sm:$0xe] }
  0x67   : > { %3529 = vmatmul.mubr.msk.bf16.gmra.mrb[4].mxu1 %vm553_vm3, %v3146_v51  ;;  %v4538_v51 = vsel %vm4255_vm7, %v909_v49, %v910_v21  ;;  %v2172_v19 = vrot.slane %v2170_v43, 4  ;;  %v917_v39 = vrot.slane %v4294_v55, 5  ;;  %v3150_v10 = vcombine.low %v4312_v28, %v4328_v37  ;;  %v3334_v55 = vld [vmem:[%s4061_s9 + $0x30] sm:$0xf]  ;;  %v3858_v20 = vld [vmem:[%s4061_s9 + $0x3c] sm:$0xff]   ;;  %v3859_v1 = vld [vmem:[%s4061_s9 + $0x48] sm:$0xff]  }
  0x68   : > { %3532 = vmatprep.mubr.msk.bf16.mxu1 %vm553_vm3, %v3147_v52  ;;  %v914_v52 = vrot.slane %v4290_v62, 5  ;;  %v3168_v41 = vcombine.low %v873_v15, %v876_v48  ;;  %v2176_v36 = vshll.u32 %v4542_v30, 16  ;;  %v2163_v21 = vor.u32 %v2162_v53, %v2159_v16  ;;  %v4574_v8 = vld [vmem:[%s4061_s9 + $0x34] sm:$0xf] }
  0x69   : > { %v2173_v28 = vor.u32 %v2172_v19, %v4548_v11  ;;  %v2190_v40 = vshll.u32 %v4555_v14, 16  ;;  %v2194_v43 = vshrl.u32 %v4555_v14, 16  ;;  %v921_v15 = vrot.slane %v4328_v37, 5 }
  0x6a   : > { %v4559_v62 = vsel %vm4255_vm7, %v3165_v34, %v914_v52  ;;  %v916_v26 = vrot.slane %v914_v52, 4  ;;  %v2214_v48 = vshll.u32 %v4574_v8, 16  ;;  %v2218_v34 = vshrl.u32 %v4574_v8, 16 }
  0x6b   : > { %v924_v16 = vrot.slane %v4337_v54, 5  ;;  %v2164_v53 = vrot.slane %v2163_v21, 4  ;;  %v2178_v52 = vrot.slane %v2176_v36, 5  ;;  %v2174_v37 = vrot.slane %v2173_v28, 4  ;;  %v4597_v36 = vld [vmem:[%s4061_s9 + $0x2c] sm:$0x1] }
  0x6c   : > { %v4571_v24 = vsel %vm4255_vm7, %v916_v26, %v917_v39  ;;  %v4593_v26 = vrot.slane %v2190_v40, 5  ;;  %v4604_v21 = vld [vmem:[%s4061_s9 + $0x38] sm:$0x1]  ;;  %v1179_v28 = vsel %vm578_vm0, %v4435_v6, 0 }
  0x6d   : > { %3615 = vmatmul.mubr.msk.bf16.vlgmr.msra.gmra.mrb[0].mxu0 %vm553_vm3, %v3854_v57  ;;  %v2184_v57 = vshll.u32 %v3331_v61, 16  ;;  %v3860_v40 = vld [vmem:[%s4061_s9 + $0x54] sm:$0xff]  }
  0x6e   : > { %3631 = vmatpush3.bf16.msra.mxu0 %v2399_v18  ;;  %3618 = vmatprep.mubr.msk.bf16.mxu0 %vm553_vm3, %v3856_v4  ;;  %v2205_v18 = vshrl.u32 %v3334_v55, 16  ;;  %v3166_v4 = vrot.slane %v850_v44, 9 }
  0x6f   : > { %3533 = vmatmul.mubr.msk.bf16.gmra.mrb[8].mxu1 %vm553_vm3, %v3148_v22  ;;  %3805 = vmatprep.subr.msk.bf16.mxu0 %vm578_vm0, %v4534_v38  ;;  %v2181_v22 = vshrl.u32 %v3331_v61, 16  ;;  %v923_v61 = vrot.slane %v921_v15, 4  ;;  %v2186_v54 = vrot.slane %v2184_v57, 5  ;;  %v2220_v57 = vrot.slane %v2218_v34, 4  ;;  %v3340_v34 = vld [vmem:[%s4061_s9 + $0x48] sm:$0xf] }
  0x70   : > { %3536 = vmatprep.mubr.msk.bf16.mxu1 %vm553_vm3, %v3149_v56  ;;  %v2208_v56 = vshll.u32 %v3334_v55, 16  ;;  %v4589_v19 = vsel %vm4255_vm7, %v3166_v4, %v921_v15  ;;  %v2196_v55 = vrot.slane %v2194_v43, 4  ;;  %v2207_v44 = vrot.slane %v2205_v18, 4  ;;  %v4615_v43 = vld [vmem:[%s4061_s9 + $0x40] sm:$0xf] }
  0x71   : > { %v2183_v39 = vrot.slane %v2181_v22, 4  ;;  %v4606_v22 = vrot.slane %v2214_v48, 5  ;;  %v3861_v18 = vld [vmem:[%s4061_s9 + $0x60] sm:$0xff]   ;;  %v2179_v4 = vsel %vm4100_vm4, %v2174_v37, %v2178_v52  ;;  %v2200_v48 = vshll.u32 %v4597_v36, 16 }
  0x72   : > { %v2253_v52 = vshrl.u32 %v3340_v34, 16  ;;  %v2256_v37 = vshll.u32 %v3340_v34, 16 }
  0x73   : > { %v2187_v15 = vor.u32 %v2186_v54, %v2183_v39  ;;  %v2221_v63 = vor.u32 %v2220_v57, %v4606_v22  ;;  %v3343_v57 = vld [vmem:[%s4061_s9 + $0x54] sm:$0xf] }
  0x74   : > { %v2255_v50 = vrot.slane %v2253_v52, 4  ;;  %v2280_v34 = vshll.u32 %v3343_v57, 16 }
  0x75   : > { %3619 = vmatmul.mubr.msk.bf16.gmra.mrb[4].mxu0 %vm553_vm3, %v3858_v20  ;;  %v2210_v20 = vrot.slane %v2208_v56, 5  ;;  %v2169_v56 = vsel %vm4100_vm4, %v2164_v53, %v4548_v11  ;;  %v2238_v11 = vshll.u32 %v4615_v43, 16  ;;  %v2242_v53 = vshrl.u32 %v4615_v43, 16 }
  0x76   : > { %3622 = vmatprep.mubr.msk.bf16.mxu0 %vm553_vm3, %v3859_v1  ;;  %v2224_v1 = vshll.u32 %v4604_v21, 16  ;;  %v3353_v54 = vcombine.low %v2169_v56, %v2179_v4  ;;  %v2222_v56 = vrot.slane %v2221_v63, 4  ;;  %v4662_v63 = vld [vmem:[%s4061_s9 + $0x50] sm:$0x1] }
  0x77   : > { %3537 = vmatmul.mubr.msk.bf16.gmra.mrb[12].mxu1 %vm553_vm3, %v3150_v10  ;;  %v4601_v10 = vsel %vm4255_vm7, %v923_v61, %v924_v16  ;;  %v4626_v16 = vld [vmem:[%s4061_s9 + $0x4c] sm:$0xf]  ;;  %v2197_v61 = vor.u32 %v2196_v55, %v4593_v26  ;;  %v2211_v6 = vor.u32 %v2210_v20, %v2207_v44  ;;  %v2188_v55 = vrot.slane %v2187_v15, 4 }
  0x78   : > { %3542 = vmatprep.mubr.msk.bf16.mxu1 %vm553_vm3, %v3168_v41  ;;  %v3337_v41 = vld [vmem:[%s4061_s9 + $0x3c] sm:$0xf]  ;;  %v2262_v39 = vshll.u32 %v4626_v16, 16  ;;  %v2202_v44 = vrot.slane %v2200_v48, 5  ;;  %v2266_v20 = vshrl.u32 %v4626_v16, 16  ;;  %v2226_v33 = vrot.slane %v2224_v1, 5 }
  0x79   : > { %v2229_v49 = vshrl.u32 %v3337_v41, 16  ;;  %v2232_v13 = vshll.u32 %v3337_v41, 16  ;;  %v2198_v41 = vrot.slane %v2197_v61, 4  ;;  %v4650_v15 = vrot.slane %v2238_v11, 5 }
  0x7a   : > { %v2244_v48 = vrot.slane %v2242_v53, 4  ;;  %v2277_v1 = vshrl.u32 %v3343_v57, 16  ;;  %v1448_v11 = vshll.u32 %v4376_v59, 16  ;;  %v2193_v53 = vsel %vm4100_vm4, %v2188_v55, %v4593_v26 }
  0x7b   : > { %v2231_v25 = vrot.slane %v2229_v49, 4  ;;  %v2234_v4 = vrot.slane %v2232_v13, 5  ;;  %v4659_v49 = vrot.slane %v2262_v39, 5  ;;  %v2268_v13 = vrot.slane %v2266_v20, 4 }
  0x7c   : > { %v2203_v52 = vsel %vm4100_vm4, %v2198_v41, %v2202_v44  ;;  %v2245_v57 = vor.u32 %v2244_v48, %v4650_v15  ;;  %v2227_v26 = vsel %vm4100_vm4, %v2222_v56, %v2226_v33  ;;  %v2279_v44 = vrot.slane %v2277_v1, 4  ;;  %v4700_v56 = vld [vmem:[%s4061_s9 + $0x5c] sm:$0x1] }
  0x7d   : > { %3623 = vmatmul.mubr.msk.bf16.gmra.mrb[8].mxu0 %vm553_vm3, %v3860_v40  ;;  %v2212_v40 = vrot.slane %v2211_v6, 4  ;;  %v2235_v20 = vor.u32 %v2234_v4, %v2231_v25  ;;  %v2269_v41 = vor.u32 %v2268_v13, %v4659_v49  ;;  %v5088_v33 = vcombine.low %v4486_v2, %v4501_v9 }
  0x7e   : > { %3626 = vmatprep.mubr.msk.bf16.mxu0 %vm553_vm3, %v3861_v18  ;;  %v3862_v18 = vld [vmem:[%s4061_s9 + $0x6c] sm:$0xff]   ;;  %v2301_v4 = vshrl.u32 %v3346_v7, 16  ;;  %v1452_v48 = vshrl.u32 %v4376_v59, 16  ;;  %v3354_v13 = vcombine.low %v2193_v53, %v2203_v52 }
  0x7f   : > { %3543 = vmatmul.mubr.msk.bf16.vlgmr.msra.gmra.mrb[0].mxu1 %vm553_vm3, %v3169_v27  ;;  %v4647_v27 = vld [vmem:[%s4061_s9 + $0x58] sm:$0xf]  ;;  %v2217_v39 = vsel %vm4100_vm4, %v2212_v40, %v4606_v22  ;;  %v5087_v22 = vcombine.low %v4480_v58, %v4492_v23  ;;  %v2282_v40 = vrot.slane %v2280_v34, 5  ;;  %v2304_v58 = vshll.u32 %v3346_v7, 16 }
  0x80   : > { %3559 = vmatpush3.bf16.msra.mxu1 %v1179_v28  ;;  %3546 = vmatprep.mubr.msk.bf16.mxu1 %vm553_vm3, %v3170_v29  ;;  %v3935_v28 = vld [vmem:[%s5070_s1 + $0x8] sm:$0x3]  ;;  %v2258_v29 = vrot.slane %v2256_v37, 5  ;;  %v2286_v61 = vshll.u32 %v4647_v27, 16  ;;  %v2290_v6 = vshrl.u32 %v4647_v27, 16  ;;  %v2653_v37 = vsel %vm578_vm0, %v4534_v38, 0 }
  0x81   : > { %3801 = vmatprep.subr.msk.bf16.mxu1 %vm578_vm0, %v3935_v28  ;;  %v2248_v28 = vshll.u32 %v4657_v46, 16  ;;  %v2272_v38 = vshll.u32 %v4662_v63, 16  ;;  %v2310_v23 = vshll.u32 %v4681_v60, 16  ;;  %v3355_v34 = vcombine.low %v2217_v39, %v2227_v26 }
  0x82   : > { %v2259_v55 = vor.u32 %v2258_v29, %v2255_v50  ;;  %v4693_v25 = vrot.slane %v2286_v61, 5  ;;  %v2236_v50 = vrot.slane %v2235_v20, 4  ;;  %v2246_v29 = vrot.slane %v2245_v57, 4 }
  0x83   : > { %v2250_v1 = vrot.slane %v2248_v28, 5  ;;  %v2274_v9 = vrot.slane %v2272_v38, 5  ;;  %v2270_v61 = vrot.slane %v2269_v41, 4  ;;  %v2296_v7 = vshll.u32 %v4700_v56, 16  ;;  %v4721_v28 = vld [vmem:[%s4061_s9 + $0x68] sm:$0x1] }
  0x84   : > { %v2260_v2 = vrot.slane %v2259_v55, 4  ;;  %v2303_v35 = vrot.slane %v2301_v4, 4  ;;  %v4711_v59 = vrot.slane %v2310_v23, 5  ;;  %v4713_v57 = vrot.slane %v1448_v11, 5 }
  0x85   : > { %3627 = vmatmul.mubr.msk.bf16.gmra.mrb[12].mxu0 %vm553_vm3, %v3862_v18  ;;  %v2292_v18 = vrot.slane %v2290_v6, 4  ;;  %v2283_v6 = vor.u32 %v2282_v40, %v2279_v44  ;;  %v1454_v53 = vrot.slane %v1452_v48, 4  ;;  %v2241_v52 = vsel %vm4100_vm4, %v2236_v50, %v4650_v15 }
  0x86   : > { %3632 = vmatprep.mubr.msk.bf16.mxu0 %vm553_vm3, %v3353_v54  ;;  %v2314_v54 = vshrl.u32 %v4681_v60, 16  ;;  %v2306_v60 = vrot.slane %v2304_v58, 5  ;;  %v2251_v39 = vsel %vm4100_vm4, %v2246_v29, %v2250_v1  ;;  %v2334_v38 = vshll.u32 %v4709_v12, 16  ;;  %v3863_v1 = vld [vmem:[%s4061_s9 + $0xc] sm:$0xff]  }
  0x87   : > { %3547 = vmatmul.mubr.msk.bf16.gmra.mrb[4].mxu1 %vm553_vm3, %v5087_v22  ;;  %v2293_v22 = vor.u32 %v2292_v18, %v4693_v25  ;;  %v2338_v44 = vshrl.u32 %v4709_v12, 16  ;;  %v5089_v11 = vcombine.low %v4520_v47, %v4538_v51  ;;  %v2265_v15 = vsel %vm4100_vm4, %v2260_v2, %v4659_v49 }
  0x88   : > { %3550 = vmatprep.mubr.msk.bf16.mxu1 %vm553_vm3, %v5088_v33  ;;  %v3349_v33 = vld [vmem:[%s4061_s9 + $0x6c] sm:$0xf]  ;;  %v2316_v20 = vrot.slane %v2314_v54, 4  ;;  %v2275_v41 = vsel %vm4100_vm4, %v2270_v61, %v2274_v9  ;;  %v2284_v40 = vrot.slane %v2283_v6, 4  ;;  %v2298_v18 = vrot.slane %v2296_v7, 5 }
  0x89   : > { %v2325_v26 = vshrl.u32 %v3349_v33, 16  ;;  %v2328_v55 = vshll.u32 %v3349_v33, 16  ;;  %v5090_v4 = vcombine.low %v4559_v62, %v4571_v24  ;;  %v2294_v47 = vrot.slane %v2293_v22, 4  ;;  %v3234_v22 = vld [vmem:[%s4061_s9 + $0x48] sm:$0xf] }
  0x8a   : > { %v2307_v51 = vor.u32 %v2306_v60, %v2303_v35  ;;  %v2320_v49 = vshll.u32 %v4721_v28, 16  ;;  %v1455_v58 = vor.u32 %v1454_v53, %v4713_v57  ;;  %v1458_v23 = vshll.u32 %v4379_v0, 16  ;;  %v4750_v60 = vld [vmem:[%s4061_s9 + $0x74] sm:$0x1] }
  0x8b   : > { %v3356_v54 = vcombine.low %v2241_v52, %v2251_v39  ;;  %v2327_v48 = vrot.slane %v2325_v26, 4  ;;  %v2330_v62 = vrot.slane %v2328_v55, 5  ;;  %v4744_v24 = vrot.slane %v2334_v38, 5 }
  0x8c   : > { %v2340_v50 = vrot.slane %v2338_v44, 4  ;;  %v3357_v29 = vcombine.low %v2265_v15, %v2275_v41  ;;  %v2289_v35 = vsel %vm4100_vm4, %v2284_v40, %v4693_v25  ;;  %v2308_v0 = vrot.slane %v2307_v51, 4  ;;  %v3865_v51 = vld [vmem:[%s4061_s9 + $0x24] sm:$0xff]  }
  0x8d   : > { %3633 = vmatmul.mubr.msk.bf16.vlgmr.msra.gmra.mrb[0].mxu0 %vm553_vm3, %v3354_v13  ;;  %v2299_v13 = vsel %vm4100_vm4, %v2294_v47, %v2298_v18  ;;  %v2322_v2 = vrot.slane %v2320_v49, 5  ;;  %v1456_v9 = vrot.slane %v1455_v58, 4  ;;  %v1460_v61 = vrot.slane %v1458_v23, 5 }
  0x8e   : > { %3649 = vmatpush3.bf16.msra.mxu0 %v2653_v37  ;;  %3636 = vmatprep.mubr.msk.bf16.mxu0 %vm553_vm3, %v3355_v34  ;;  %v2317_v37 = vor.u32 %v2316_v20, %v4711_v59  ;;  %v2548_v6 = vrot.slane %v4508_v31, 5  ;;  %v2331_v7 = vor.u32 %v2330_v62, %v2327_v48  ;;  %v2341_v33 = vor.u32 %v2340_v50, %v4744_v24  ;;  %v3369_v20 = vld [vmem:[%s4061_s9 + $0x18] sm:$0xe]  ;;  %v3371_v62 = vld [vmem:[%s4061_s9 + $0x30] sm:$0xe] }
  0x8f   : > { %3551 = vmatmul.mubr.msk.bf16.gmra.mrb[8].mxu1 %vm553_vm3, %v5089_v11  ;;  %v2344_v25 = vshll.u32 %v4750_v60, 16  ;;  %v5091_v53 = vcombine.low %v4589_v19, %v4601_v10  ;;  %v3358_v52 = vcombine.low %v2289_v35, %v2299_v13  ;;  %v2313_v31 = vsel %vm4100_vm4, %v2308_v0, %v4711_v59  ;;  %v3864_v59 = vld [vmem:[%s4061_s9 + $0x18] sm:$0xff]  }
  0x90   : > { %3554 = vmatprep.mubr.msk.bf16.mxu1 %vm553_vm3, %v5090_v4  ;;  %v2318_v34 = vrot.slane %v2317_v37, 4  ;;  %v1439_v26 = vshrl.u32 %v3234_v22, 16  ;;  %v1442_v55 = vshll.u32 %v3234_v22, 16  ;;  %v3377_v19 = vrot.slane %v3369_v20, 9  ;;  %v3231_v4 = vld [vmem:[%s4061_s9 + $0x3c] sm:$0xf] }
  0x91   : > { %v2550_v10 = vrot.slane %v2548_v6, 4  ;;  %v2551_v38 = vrot.slane %v4542_v30, 5  ;;  %v1461_v44 = vsel %vm4100_vm4, %v1456_v9, %v1460_v61  ;;  %v2332_v11 = vrot.slane %v2331_v7, 4  ;;  %v3370_v30 = vld [vmem:[%s4061_s9 + $0x24] sm:$0xe]  ;;  %v3866_v22 = vld [vmem:[%s4061_s9 + $0x30] sm:$0xff]  }
  0x92   : > { %v2323_v39 = vsel %vm4100_vm4, %v2318_v34, %v2322_v2  ;;  %v2342_v15 = vrot.slane %v2341_v33, 4  ;;  %v2346_v41 = vrot.slane %v2344_v25, 5  ;;  %v1441_v40 = vrot.slane %v1439_v26, 4  ;;  %v3867_v20 = vld [vmem:[%s4061_s9 + $0x3c] sm:$0xff]   ;;  %v3237_v26 = vld [vmem:[%s4061_s9 + $0x54] sm:$0xf] }
  0x93   : > { %v3359_v18 = vcombine.low %v2313_v31, %v2323_v39  ;;  %v1444_v47 = vrot.slane %v1442_v55, 5  ;;  %v2549_v37 = vsel %vm4255_vm7, %v3377_v19, %v2548_v6  ;;  %v2552_v49 = vsel %vm4255_vm7, %v2550_v10, %v2551_v38  ;;  %v3373_v38 = vld [vmem:[%s4061_s9 + $0x48] sm:$0xe] }
  0x94   : > { %v2555_v58 = vrot.slane %v4555_v14, 5  ;;  %v2347_v48 = vsel %vm4100_vm4, %v2342_v15, %v2346_v41  ;;  %v2562_v50 = vrot.slane %v4574_v8, 5  ;;  %v1418_v35 = vshll.u32 %v3231_v4, 16 }
  0x95   : > { %3637 = vmatmul.mubr.msk.bf16.gmra.mrb[4].mxu0 %vm553_vm3, %v3356_v54  ;;  %v1445_v23 = vor.u32 %v1444_v47, %v1441_v40  ;;  %v2337_v54 = vsel %vm4100_vm4, %v2332_v11, %v4744_v24  ;;  %v1424_v14 = vshll.u32 %v4358_v42, 16  ;;  %v3378_v24 = vrot.slane %v3370_v30, 9 }
  0x96   : > { %3640 = vmatprep.mubr.msk.bf16.mxu0 %vm553_vm3, %v3357_v29  ;;  %v1415_v29 = vshrl.u32 %v3231_v4, 16  ;;  %v2558_v8 = vrot.slane %v4597_v36, 5  ;;  %v3386_v0 = vcombine.low %v2549_v37, %v2552_v49  ;;  %v2557_v34 = vrot.slane %v2555_v58, 4  ;;  %v3868_v37 = vld [vmem:[%s4061_s9 + $0x48] sm:$0xff]  }
  0x97   : > { %3555 = vmatmul.mubr.msk.bf16.gmra.mrb[12].mxu1 %vm553_vm3, %v5091_v53  ;;  %v1446_v13 = vrot.slane %v1445_v23, 4  ;;  %v3379_v2 = vrot.slane %v3371_v62, 9  ;;  %v3360_v61 = vcombine.low %v2337_v54, %v2347_v48  ;;  %v2564_v6 = vrot.slane %v2562_v50, 4  ;;  %v3869_v23 = vld [vmem:[%s4061_s9 + $0x54] sm:$0xff]  }
  0x98   : > { %3560 = vmatprep.mubr.msk.bf16.mxu1 %vm553_vm3, %v3863_v1  ;;  %v1428_v1 = vshrl.u32 %v4358_v42, 16  ;;  %v2565_v42 = vrot.slane %v4604_v21, 5  ;;  %v1417_v7 = vrot.slane %v1415_v29, 4  ;;  %v1420_v33 = vrot.slane %v1418_v35, 5 }
  0x99   : > { %v1451_v9 = vsel %vm4100_vm4, %v1446_v13, %v4713_v57  ;;  %v4806_v25 = vrot.slane %v1424_v14, 5  ;;  %v2556_v53 = vsel %vm4255_vm7, %v3378_v24, %v2555_v58  ;;  %v2559_v57 = vsel %vm4255_vm7, %v2557_v34, %v2558_v8  ;;  %v3374_v24 = vld [vmem:[%s4061_s9 + $0x54] sm:$0xe]  ;;  %v5092_v8 = vld [vmem:[#allocation5_spill] sm:$0xff] }
  0x9a   : > { %v1430_v36 = vrot.slane %v1428_v1, 4  ;;  %v2563_v21 = vsel %vm4255_vm7, %v3379_v2, %v2562_v50  ;;  %v2569_v31 = vrot.slane %v4615_v43, 5  ;;  %v1434_v39 = vshll.u32 %v4361_v45, 16  ;;  %v3240_v50 = vld [vmem:[%s4061_s9 + $0x60] sm:$0xf] }
  0x9b   : > { %v2566_v55 = vsel %vm4255_vm7, %v2564_v6, %v2565_v42  ;;  %v1421_v19 = vor.u32 %v1420_v33, %v1417_v7  ;;  %v3387_v43 = vcombine.low %v2556_v53, %v2559_v57  ;;  %v2572_v11 = vrot.slane %v4657_v46, 5  ;;  %v5094_v33 = vld [vmem:[#allocation2_spill] sm:$0xff] }
  0x9c   : > { %v1431_v10 = vor.u32 %v1430_v36, %v4806_v25  ;;  %v1463_v15 = vshrl.u32 %v3237_v26, 16  ;;  %v1466_v41 = vshll.u32 %v3237_v26, 16  ;;  %v1472_v40 = vshll.u32 %v4387_v17, 16 }
  0x9d   : > { %3641 = vmatmul.mubr.msk.bf16.gmra.mrb[8].mxu0 %vm553_vm3, %v3358_v52  ;;  %v3372_v52 = vld [vmem:[%s4061_s9 + $0x3c] sm:$0xe]  ;;  %v2571_v4 = vrot.slane %v2569_v31, 4  ;;  %v1436_v47 = vrot.slane %v1434_v39, 5  ;;  %v2579_v58 = vrot.slane %v4662_v63, 5  ;;  %v2583_v63 = vrot.slane %v4647_v27, 5 }
  0x9e   : > { %3644 = vmatprep.mubr.msk.bf16.mxu0 %vm553_vm3, %v3359_v18  ;;  %v3380_v45 = vrot.slane %v3372_v52, 9  ;;  %v3388_v18 = vcombine.low %v2563_v21, %v2566_v55  ;;  %v1432_v49 = vrot.slane %v1431_v10, 4  ;;  %v1465_v46 = vrot.slane %v1463_v15, 4  ;;  %v3375_v27 = vld [vmem:[%s4061_s9 + $0x60] sm:$0xe] }
  0x9f   : > { %3561 = vmatmul.mubr.msk.bf16.vlgmr.msra.gmra.mrb[0].mxu1 %vm553_vm3, %v3864_v59  ;;  %v1476_v59 = vshrl.u32 %v4387_v17, 16  ;;  %v1468_v54 = vrot.slane %v1466_v41, 5  ;;  %v1474_v48 = vrot.slane %v1472_v40, 5  ;;  %v2573_v29 = vsel %vm4255_vm7, %v2571_v4, %v2572_v11  ;;  %v3870_v52 = vld [vmem:[%s4061_s9 + $0x60] sm:$0xff]  }
  0xa0   : > { %3667 = vmatpush3.bf16.msra.mxu1 %v4043_v3  ;;  %3564 = vmatprep.mubr.msk.bf16.mxu1 %vm553_vm3, %v3865_v51  ;;  %v4803_v3 = vcombine.low %v1451_v9, %v1461_v44  ;;  %v2576_v44 = vrot.slane %v4626_v16, 5  ;;  %v3381_v51 = vrot.slane %v3373_v38, 9  ;;  %v1422_v16 = vrot.slane %v1421_v19, 4  ;;  %v5093_v9 = vld [vmem:[#allocation3_spill] sm:$0xff] }
  0xa1   : > { %v1478_v62 = vrot.slane %v1476_v59, 4  ;;  %v2570_v17 = vsel %vm4255_vm7, %v3380_v45, %v2569_v31  ;;  %v1437_v1 = vsel %vm4100_vm4, %v1432_v49, %v1436_v47  ;;  %v1487_v34 = vshrl.u32 %v3240_v50, 16  ;;  %v3376_v47 = vld [vmem:[%s4061_s9 + $0x6c] sm:$0xe]  ;;  %s3121_s9 = sshll.u32 %s5108_s16, 5 }
  0xa2   : > { %v2578_v30 = vrot.slane %v2576_v44, 4  ;;  %v2577_v35 = vsel %vm4255_vm7, %v3381_v51, %v2576_v44  ;;  %v1427_v14 = vsel %vm4100_vm4, %v1422_v16, %v4806_v25  ;;  %v1490_v2 = vshll.u32 %v3240_v50, 16  ;;  %s4976_s16 = sadd.s32 %s3121_s9, %s3120_s15 }
  0xa3   : > { %v1500_v6 = vshrl.u32 %v5093_v9, 16  ;;  %v3389_v42 = vcombine.low %v2570_v17, %v2573_v29  ;;  %v1479_v7 = vor.u32 %v1478_v62, %v1474_v48  ;;  %v1482_v25 = vshll.u32 %v5094_v33, 16  ;;  %s3122_s10 = sshll.u32 %s4976_s16, 3 }
  0xa4   : > { %v2580_v13 = vsel %vm4255_vm7, %v2578_v30, %v2579_v58  ;;  %v2585_v53 = vrot.slane %v2583_v63, 4  ;;  %v2586_v57 = vrot.slane %v4700_v56, 5  ;;  %v3248_v21 = vcombine.low %v1427_v14, %v1437_v1  ;;  %s4994_s13 = scalar_lea.vmem %s5073_s4, %s3122_s10 }
  0xa5   : > { %3645 = vmatmul.mubr.msk.bf16.gmra.mrb[12].mxu0 %vm553_vm3, %v3360_v61  ;;  %v1496_v61 = vshll.u32 %v5093_v9, 16  ;;  %v3390_v36 = vcombine.low %v2577_v35, %v2580_v13  ;;  %v3383_v31 = vrot.slane %v3375_v27, 9  ;;  %v2593_v26 = vrot.slane %v4721_v28, 5 }
  0xa6   : > { %3650 = vmatprep.mubr.msk.bf16.mxu0 %vm553_vm3, %v3386_v0  ;;  %v2590_v0 = vrot.slane %v5092_v8, 5  ;;  %v1489_v55 = vrot.slane %v1487_v34, 4  ;;  %v1492_v19 = vrot.slane %v1490_v2, 5  ;;  %v1502_v38 = vrot.slane %v1500_v6, 4  ;;  %v4905_v2 = vld [vmem:[%s5072_s3] ss:$0 sm:$0xff] }
  0xa7   : > { %3565 = vmatmul.mubr.msk.bf16.gmra.mrb[4].mxu1 %vm553_vm3, %v3866_v22  ;;  %v1469_v22 = vor.u32 %v1468_v54, %v1465_v46  ;;  %v1498_v10 = vrot.slane %v1496_v61, 5  ;;  %v1484_v45 = vrot.slane %v1482_v25, 5  ;;  %v2587_v28 = vsel %vm4255_vm7, %v2585_v53, %v2586_v57 }
  0xa8   : > { %3568 = vmatprep.mubr.msk.bf16.mxu1 %vm553_vm3, %v3867_v20  ;;  %v3382_v20 = vrot.slane %v3374_v24, 9  ;;  %v2592_v39 = vrot.slane %v2590_v0, 4  ;;  %v2591_v11 = vsel %vm4255_vm7, %v3383_v31, %v2590_v0  ;;  %v2597_v15 = vrot.slane %v4709_v12, 5 }
  0xa9   : > { %v1470_v44 = vrot.slane %v1469_v22, 4  ;;  %v1493_v40 = vor.u32 %v1492_v19, %v1489_v55  ;;  %v1503_v59 = vor.u32 %v1502_v38, %v1498_v10  ;;  %v3384_v30 = vrot.slane %v3376_v47, 9 }
  0xaa   : > { %v2584_v56 = vsel %vm4255_vm7, %v3382_v20, %v2583_v63  ;;  %v2594_v41 = vsel %vm4255_vm7, %v2592_v39, %v2593_v26  ;;  %v2599_v12 = vrot.slane %v2597_v15, 4  ;;  %v2600_v58 = vrot.slane %v4750_v60, 5 }
  0xab   : > { %v1475_v51 = vsel %vm4100_vm4, %v1470_v44, %v1474_v48  ;;  %v3391_v16 = vcombine.low %v2584_v56, %v2587_v28  ;;  %v3392_v49 = vcombine.low %v2591_v11, %v2594_v41  ;;  %v1494_v46 = vrot.slane %v1493_v40, 4 }
  0xac   : > { %v1504_v54 = vrot.slane %v1503_v59, 4  ;;  %v2598_v48 = vsel %vm4255_vm7, %v3384_v30, %v2597_v15  ;;  %v2601_v50 = vsel %vm4255_vm7, %v2599_v12, %v2600_v58 }
  0xad   : > { %3651 = vmatmul.mubr.msk.bf16.vlgmr.msra.gmra.mrb[0].mxu0 %vm553_vm3, %v3387_v43  ;;  %v1480_v43 = vrot.slane %v1479_v7, 4  ;;  %v1499_v60 = vsel %vm4100_vm4, %v1494_v46, %v1498_v10  ;;  %v3393_v29 = vcombine.low %v2598_v48, %v2601_v50 }
  0xae   : > { %3654 = vmatprep.mubr.msk.bf16.mxu0 %vm553_vm3, %v3388_v18  ;;  %v5095_v18 = vld [vmem:[#allocation4_spill] sm:$0xff] }
  0xaf   : > { %3569 = vmatmul.mubr.msk.bf16.gmra.mrb[8].mxu1 %vm553_vm3, %v3868_v37  ;;  %v1506_v4 = vshll.u32 %v5095_v18, 16  ;;  %v1485_v37 = vsel %vm4100_vm4, %v1480_v43, %v1484_v45 }
  0xb0   : > { %3572 = vmatprep.mubr.msk.bf16.mxu1 %vm553_vm3, %v3869_v23  ;;  %v3250_v23 = vcombine.low %v1475_v51, %v1485_v37 }
  0xb1   : > { %v1508_v62 = vrot.slane %v1506_v4, 5 }
  0xb3   : > { %v1509_v17 = vsel %vm4100_vm4, %v1504_v54, %v1508_v62 }
  0xb4   : > { %v3251_v35 = vcombine.low %v1499_v60, %v1509_v17 }
  0xb5   : > { %3655 = vmatmul.mubr.msk.bf16.gmra.mrb[4].mxu0 %vm553_vm3, %v3389_v42 }
  0xb6   : > { %3658 = vmatprep.mubr.msk.bf16.mxu0 %vm553_vm3, %v3390_v36 }
  0xb7   : > { %3573 = vmatmul.mubr.msk.bf16.gmra.mrb[12].mxu1 %vm553_vm3, %v3870_v52 }
  0xb8   : > { %3586 = vmatprep.mubr.msk.bf16.mxu1 %vm553_vm3, %v3248_v21 }
  0xbd   : > { %3659 = vmatmul.mubr.msk.bf16.gmra.mrb[8].mxu0 %vm553_vm3, %v3391_v16 }
  0xbe   : > { %3662 = vmatprep.mubr.msk.bf16.mxu0 %vm553_vm3, %v3392_v49 }
  0xbf   : > { %3587 = vmatmul.mubr.msk.bf16.vlgmr.msra.gmra.mrb[8].mxu1 %vm553_vm3, %v4803_v3 }
  0xc0   : > { %3590 = vmatprep.mubr.msk.bf16.mxu1 %vm553_vm3, %v3250_v23 }
  0xc5   : > { %3663 = vmatmul.mubr.msk.bf16.gmra.mrb[12].mxu0 %vm553_vm3, %v3393_v29 }
  0xc7   : > { %3591 = vmatmul.mubr.msk.bf16.gmra.mrb[12].mxu1 %vm553_vm3, %v3251_v35 }
 0x172   : > { %v3562_v3 = vpop.f32.mrb[0].mxu1 }
 0x173   : > { %v1215_v63 = vpop.f32.mrb[1].mxu1 }
 0x174   : > { %v3563_v14 = vpop.f32.mrb[2].mxu1 }
 0x175   : > { %v1218_v1 = vpop.f32.mrb[3].mxu1 }
 0x17a   : > { %v3566_v5 = vpop.f32.mrb[4].mxu1 }
 0x17b   : > { %v1231_v13 = vpop.f32.mrb[5].mxu1 }
 0x17c   : > { %v3567_v24 = vpop.f32.mrb[6].mxu1 }
 0x17d   : > { %v1234_v8 = vpop.f32.mrb[7].mxu1 }
 0x180   : > { %v3652_v0 = vpop.f32.mrb[0].mxu0 }
 0x181   : > { %v3668_v27 = vadd.f32 %v3652_v0, %v3562_v3  ;;  %v2689_v34 = vpop.f32.mrb[1].mxu0 }
 0x182   : > { %v3669_v9 = vadd.f32 %v2689_v34, %v1215_v63  ;;  %v3653_v61 = vpop.f32.mrb[2].mxu0 }
 0x183   : > { %v2777_v6 = vmul.f32 %v3668_v27, %v4900_v32  ;;  %v3670_v42 = vadd.f32 %v3653_v61, %v3563_v14  ;;  %v2692_v22 = vpop.f32.mrb[3].mxu0 }
 0x184   : > { %v2775_v7 = vmul.f32 %v3669_v9, %v4900_v32  ;;  %v3671_v33 = vadd.f32 %v2692_v22, %v1218_v1 }
 0x185   : > { %v4910_v25 = vadd.f32 %v4905_v2, %v2777_v6  ;;  %v2778_v36 = vmul.f32 %v3670_v42, %v4900_v32 }
 0x186   : > { %v4914_v20 = vadd.f32 %v4905_v2, %v2775_v7  ;;  %v2776_v53 = vmul.f32 %v3671_v33, %v4900_v32 }
 0x187   : > { %v3406_v57 = vmul.f32 -1.442695, %v4910_v25  ;;  %v4919_v52 = vadd.f32 %v4905_v2, %v2778_v36 }
 0x188   : > { %v3404_v21 = vmul.f32 -1.442695, %v4914_v20  ;;  %v4923_v31 = vadd.f32 %v4905_v2, %v2776_v53  ;;  %v3656_v39 = vpop.f32.mrb[4].mxu0 }
 0x189   : > { %3871 = vpow2.f32 %v3406_v57  ;;  %v3407_v26 = vmul.f32 -1.442695, %v4919_v52  ;;  %v3672_v55 = vadd.f32 %v3656_v39, %v3566_v5  ;;  %v2705_v19 = vpop.f32.mrb[5].mxu0 }
 0x18a   : > { %3873 = vpow2.f32 %v3404_v21  ;;  %v3405_v10 = vmul.f32 -1.442695, %v4923_v31  ;;  %v3673_v38 = vadd.f32 %v2705_v19, %v1231_v13  ;;  %v3657_v44 = vpop.f32.mrb[6].mxu0 }
 0x18b   : > { %3875 = vpow2.f32 %v3407_v26  ;;  %v2781_v43 = vmul.f32 %v3672_v55, %v4900_v32  ;;  %v3674_v45 = vadd.f32 %v3657_v44, %v3567_v24  ;;  %v2708_v56 = vpop.f32.mrb[7].mxu0 }
 0x18c   : > { %3877 = vpow2.f32 %v3405_v10  ;;  %v2779_v28 = vmul.f32 %v3673_v38, %v4900_v32  ;;  %v3675_v11 = vadd.f32 %v2708_v56, %v1234_v8 }
 0x18d   : > { %v4931_v15 = vadd.f32 %v4905_v2, %v2781_v43  ;;  %v2782_v41 = vmul.f32 %v3674_v45, %v4900_v32 }
 0x18e   : > { %v4935_v40 = vadd.f32 %v4905_v2, %v2779_v28  ;;  %v2780_v59 = vmul.f32 %v3675_v11, %v4900_v32 }
 0x18f   : > { %v3410_v18 = vmul.f32 -1.442695, %v4931_v15  ;;  %v4944_v4 = vadd.f32 %v4905_v2, %v2782_v41 }
 0x190   : > { %v3408_v47 = vmul.f32 -1.442695, %v4935_v40  ;;  %v4948_v51 = vadd.f32 %v4905_v2, %v2780_v59  ;;  %v3660_v37 = vpop.f32.mrb[8].mxu0 }
 0x191   : > { %3879 = vpow2.f32 %v3410_v18  ;;  %v3411_v16 = vmul.f32 -1.442695, %v4944_v4  ;;  %v2721_v30 = vpop.f32.mrb[9].mxu0 }
 0x192   : > { %v3588_v49 = vpop.f32.mrb[8].mxu1  ;;  %3881 = vpow2.f32 %v3408_v47  ;;  %v3409_v12 = vmul.f32 -1.442695, %v4948_v51  ;;  %v3661_v46 = vpop.f32.mrb[10].mxu0 }
 0x193   : > { %v3676_v58 = vadd.f32 %v3660_v37, %v3588_v49  ;;  %v1629_v23 = vpop.f32.mrb[9].mxu1  ;;  %v3872_v54 = vpop.eup %3871  ;;  %3883 = vpow2.f32 %v3411_v16 }
 0x194   : > { %v3677_v62 = vadd.f32 %v2721_v30, %v1629_v23  ;;  %v3589_v48 = vpop.f32.mrb[10].mxu1  ;;  %v2724_v50 = vpop.f32.mrb[11].mxu0  ;;  %v2864_v17 = vadd.f32 1.0, %v3872_v54  ;;  %3885 = vpow2.f32 %v3409_v12 }
 0x195   : > { %v3874_v60 = vpop.eup %3873  ;;  %v2785_v29 = vmul.f32 %v3676_v58, %v4900_v32  ;;  %v3678_v35 = vadd.f32 %v3661_v46, %v3589_v48  ;;  %v1632_v3 = vpop.f32.mrb[11].mxu1 }
 0x196   : > { %v3876_v63 = vpop.eup %3875  ;;  %v2862_v14 = vadd.f32 1.0, %v3874_v60  ;;  %v2783_v1 = vmul.f32 %v3677_v62, %v4900_v32  ;;  %v3679_v5 = vadd.f32 %v2724_v50, %v1632_v3  ;;  %3887 = vrcp.f32 %v2864_v17 }
 0x197   : > { %v3878_v13 = vpop.eup %3877  ;;  %v2865_v24 = vadd.f32 1.0, %v3876_v63  ;;  %v4959_v8 = vadd.f32 %v4905_v2, %v2785_v29  ;;  %v2786_v0 = vmul.f32 %v3678_v35, %v4900_v32 }
 0x198   : > { %3889 = vrcp.f32 %v2862_v14  ;;  %v2863_v27 = vadd.f32 1.0, %v3878_v13  ;;  %v4965_v34 = vadd.f32 %v4905_v2, %v2783_v1  ;;  %v2784_v9 = vmul.f32 %v3679_v5, %v4900_v32  ;;  %v3664_v42 = vpop.f32.mrb[12].mxu0 }
 0x199   : > { %3891 = vrcp.f32 %v2865_v24  ;;  %v3414_v61 = vmul.f32 -1.442695, %v4959_v8  ;;  %v4970_v6 = vadd.f32 %v4905_v2, %v2786_v0  ;;  %v2737_v36 = vpop.f32.mrb[13].mxu0 }
 0x19a   : > { %3893 = vrcp.f32 %v2863_v27  ;;  %v3412_v22 = vmul.f32 -1.442695, %v4965_v34  ;;  %v4974_v7 = vadd.f32 %v4905_v2, %v2784_v9  ;;  %v3592_v33 = vpop.f32.mrb[12].mxu1  ;;  %v3665_v39 = vpop.f32.mrb[14].mxu0 }
 0x19b   : > { %3895 = vpow2.f32 %v3414_v61  ;;  %v3415_v53 = vmul.f32 -1.442695, %v4970_v6  ;;  %v3680_v57 = vadd.f32 %v3664_v42, %v3592_v33  ;;  %v1645_v21 = vpop.f32.mrb[13].mxu1  ;;  %v3880_v26 = vpop.eup %3879 }
 0x19c   : > { %3897 = vpow2.f32 %v3412_v22  ;;  %v3413_v55 = vmul.f32 -1.442695, %v4974_v7  ;;  %v3681_v19 = vadd.f32 %v2737_v36, %v1645_v21  ;;  %v3593_v10 = vpop.f32.mrb[14].mxu1  ;;  %v2740_v38 = vpop.f32.mrb[15].mxu0  ;;  %v2868_v43 = vadd.f32 1.0, %v3880_v26 }
 0x19d   : > { %v3882_v44 = vpop.eup %3881  ;;  %3899 = vpow2.f32 %v3415_v53  ;;  %v2789_v45 = vmul.f32 %v3680_v57, %v4900_v32  ;;  %v3682_v56 = vadd.f32 %v3665_v39, %v3593_v10  ;;  %v1648_v28 = vpop.f32.mrb[15].mxu1 }
 0x19e   : > { %v3884_v11 = vpop.eup %3883  ;;  %v2866_v41 = vadd.f32 1.0, %v3882_v44  ;;  %3901 = vpow2.f32 %v3413_v55  ;;  %v2787_v59 = vmul.f32 %v3681_v19, %v4900_v32  ;;  %v3683_v18 = vadd.f32 %v2740_v38, %v1648_v28 }
 0x19f   : > { %v3886_v47 = vpop.eup %3885  ;;  %3903 = vrcp.f32 %v2868_v43  ;;  %v2869_v37 = vadd.f32 1.0, %v3884_v11  ;;  %v4984_v16 = vadd.f32 %v4905_v2, %v2789_v45  ;;  %v2790_v49 = vmul.f32 %v3682_v56, %v4900_v32 }
 0x1a0   : > { %3905 = vrcp.f32 %v2866_v41  ;;  %v2867_v30 = vadd.f32 1.0, %v3886_v47  ;;  %v4988_v12 = vadd.f32 %v4905_v2, %v2787_v59  ;;  %v2788_v58 = vmul.f32 %v3683_v18, %v4900_v32  ;;  %v3888_v23 = vpop.eup %3887 }
 0x1a1   : > { %3907 = vrcp.f32 %v2869_v37  ;;  %v3418_v46 = vmul.f32 -1.442695, %v4984_v16  ;;  %v4998_v54 = vadd.f32 %v4905_v2, %v2790_v49  ;;  %v2912_v48 = vmul.f32 %v3888_v23, %v4910_v25 }
 0x1a2   : > { %v3890_v62 = vpop.eup %3889  ;;  %3909 = vrcp.f32 %v2867_v30  ;;  %v3416_v32 = vmul.f32 -1.442695, %v4988_v12  ;;  %v5003_v50 = vadd.f32 %v4905_v2, %v2788_v58 }
 0x1a3   : > { %v3892_v60 = vpop.eup %3891  ;;  %v2910_v17 = vmul.f32 %v3890_v62, %v4914_v20  ;;  %3911 = vpow2.f32 %v3418_v46  ;;  %v3419_v29 = vmul.f32 -1.442695, %v4998_v54  ;;  %2929 = vst.msk [vmem:[%s4994_s13 + $0x10] sm:$0xff] %vm2926_vm8, %v2912_v48 }
 0x1a4   : > { %v3894_v35 = vpop.eup %3893  ;;  %v2913_v3 = vmul.f32 %v3892_v60, %v4919_v52  ;;  %3913 = vpow2.f32 %v3416_v32  ;;  %v3417_v25 = vmul.f32 -1.442695, %v5003_v50 }
 0x1a5   : > { %v3896_v63 = vpop.eup %3895  ;;  %2927 = vst.msk [vmem:[%s4994_s13] sm:$0xff] %vm2926_vm8, %v2910_v17  ;;  %v2911_v2 = vmul.f32 %v3894_v35, %v4923_v31  ;;  %3915 = vpow2.f32 %v3419_v29 }
 0x1a6   : > { %v3898_v14 = vpop.eup %3897  ;;  %2930 = vst.msk [vmem:[%s4994_s13 + $0x18] sm:$0xff] %vm2926_vm8, %v2913_v3  ;;  %v2872_v20 = vadd.f32 1.0, %v3896_v63  ;;  %3917 = vpow2.f32 %v3417_v25 }
 0x1a7   : > { %v3900_v1 = vpop.eup %3899  ;;  %2928 = vst.msk [vmem:[%s4994_s13 + $0x8] sm:$0xff] %vm2926_vm8, %v2911_v2  ;;  %v2870_v5 = vadd.f32 1.0, %v3898_v14 }
 0x1a8   : > { %v3902_v52 = vpop.eup %3901  ;;  %3919 = vrcp.f32 %v2872_v20  ;;  %v2873_v13 = vadd.f32 1.0, %v3900_v1 }
 0x1a9   : > { %v3904_v24 = vpop.eup %3903  ;;  %3921 = vrcp.f32 %v2870_v5  ;;  %v2871_v0 = vadd.f32 1.0, %v3902_v52 }
 0x1aa   : > { %v3906_v31 = vpop.eup %3905  ;;  %v2916_v27 = vmul.f32 %v3904_v24, %v4931_v15  ;;  %3923 = vrcp.f32 %v2873_v13 }
 0x1ab   : > { %v3908_v9 = vpop.eup %3907  ;;  %v2914_v61 = vmul.f32 %v3906_v31, %v4935_v40  ;;  %3925 = vrcp.f32 %v2871_v0 }
 0x1ac   : > { %v3910_v42 = vpop.eup %3909  ;;  %2933 = vst.msk [vmem:[%s4994_s13 + $0x30] sm:$0xff] %vm2926_vm8, %v2916_v27  ;;  %v2917_v22 = vmul.f32 %v3908_v9, %v4944_v4 }
 0x1ad   : > { %v3912_v33 = vpop.eup %3911  ;;  %2931 = vst.msk [vmem:[%s4994_s13 + $0x20] sm:$0xff] %vm2926_vm8, %v2914_v61  ;;  %v2915_v36 = vmul.f32 %v3910_v42, %v4948_v51 }
 0x1ae   : > { %v3914_v53 = vpop.eup %3913  ;;  %2934 = vst.msk [vmem:[%s4994_s13 + $0x38] sm:$0xff] %vm2926_vm8, %v2917_v22  ;;  %v2876_v57 = vadd.f32 1.0, %v3912_v33 }
 0x1af   : > { %v3916_v15 = vpop.eup %3915  ;;  %2932 = vst.msk [vmem:[%s4994_s13 + $0x28] sm:$0xff] %vm2926_vm8, %v2915_v36  ;;  %v2874_v40 = vadd.f32 1.0, %v3914_v53 }
 0x1b0   : > { %v3918_v21 = vpop.eup %3917  ;;  %3927 = vrcp.f32 %v2876_v57  ;;  %v2877_v39 = vadd.f32 1.0, %v3916_v15 }
 0x1b1   : > { %3929 = vrcp.f32 %v2874_v40  ;;  %v2875_v4 = vadd.f32 1.0, %v3918_v21 }
 0x1b2   : > { %v3920_v26 = vpop.eup %3919  ;;  %3931 = vrcp.f32 %v2877_v39 }
 0x1b3   : > { %v3922_v51 = vpop.eup %3921  ;;  %v2920_v55 = vmul.f32 %v3920_v26, %v4959_v8  ;;  %3933 = vrcp.f32 %v2875_v4 }
 0x1b4   : > { %v3924_v19 = vpop.eup %3923  ;;  %v2918_v10 = vmul.f32 %v3922_v51, %v4965_v34 }
 0x1b5   : > { %v3926_v38 = vpop.eup %3925  ;;  %2937 = vst.msk [vmem:[%s4994_s13 + $0x50] sm:$0xff] %vm2926_vm8, %v2920_v55  ;;  %v2921_v44 = vmul.f32 %v3924_v19, %v4970_v6 }
 0x1b6   : > { %2935 = vst.msk [vmem:[%s4994_s13 + $0x40] sm:$0xff] %vm2926_vm8, %v2918_v10  ;;  %v2919_v43 = vmul.f32 %v3926_v38, %v4974_v7 }
 0x1b7   : > { %2938 = vst.msk [vmem:[%s4994_s13 + $0x58] sm:$0xff] %vm2926_vm8, %v2921_v44 }
 0x1b8   : > { %2936 = vst.msk [vmem:[%s4994_s13 + $0x48] sm:$0xff] %vm2926_vm8, %v2919_v43 }
 0x1ba   : > { %v3928_v8 = vpop.eup %3927 }
 0x1bb   : > { %v3930_v45 = vpop.eup %3929  ;;  %v2924_v34 = vmul.f32 %v3928_v8, %v4984_v16 }
 0x1bc   : > { %v3932_v56 = vpop.eup %3931  ;;  %v2922_v28 = vmul.f32 %v3930_v45, %v4988_v12 }
 0x1bd   : > { %v3934_v11 = vpop.eup %3933  ;;  %2941 = vst.msk [vmem:[%s4994_s13 + $0x70] sm:$0xff] %vm2926_vm8, %v2924_v34  ;;  %v2925_v6 = vmul.f32 %v3932_v56, %v4998_v54 }
 0x1be   : > { %2939 = vst.msk [vmem:[%s4994_s13 + $0x60] sm:$0xff] %vm2926_vm8, %v2922_v28  ;;  %v2923_v7 = vmul.f32 %v3934_v11, %v5003_v50 }
 0x1bf   : > { %2942 = vst.msk [vmem:[%s4994_s13 + $0x78] sm:$0xff] %vm2926_vm8, %v2925_v6 }
 0x1c0   : > { %2940 = vst.msk [vmem:[%s4994_s13 + $0x68] sm:$0xff] %vm2926_vm8, %v2923_v7 }
 0x1c1 PF: > { %s14_s19 = sadd.s32 1, %s3974_s19   ;;  %s5097_s15 = smov %s3966_s17 }
 0x1c2   : > { %p11_p7 = scmp.ge.s32.totalorder %s14_s19, 6   ;;  %s5098_s16 = smov %s3970_s18 }
 0x1c3   : > { %s5099_s17 = smov %s5102_s20  ;;  %s5100_s18 = smov %s5106_s21 }
 0x1c4   :  { %13 = sbr.rel (!%p11_p7) target bundleno = 3 (0x3), region = 86 }

</bundles_post_ra>
